<compile_context>
chip_gen: v7x
topology: tpu7x:2x2x1
jax: 0.10.0
libtpu: 0.0.40
codegen_flags: <defaults>
</compile_context>

<pallas_src>
import functools

import numpy as np

import jax
import jax.numpy as jnp
from jax.experimental import pallas as pl
from jax.experimental.pallas import tpu as pltpu

HIDDEN = 32
LANE = 128
HYB_SIZES = (1, 4, 3, 7, 7)          # s, p, d, a, lonepair head widths
HYB_OUT = sum(HYB_SIZES)             # 22
COL_HYB = HIDDEN                     # fused node-kernel output column layout
COL_A = HIDDEN + HYB_OUT             # 54
COL_B = COL_A + HIDDEN               # 86
COL_END = COL_B + HIDDEN             # 118  (<= LANE)
VMEM_LIMIT = 32 * 1024 * 1024


def _round_up(x, m):
    return ((x + m - 1) // m) * m


def _supports_bf16_vpu():
    # bf16 VALU math is a win on v6e / v7x; on v5e and older keep the VPU path f32.
    try:
        kind = jax.devices()[0].device_kind.lower()
    except Exception:
        return False
    return not any(tag in kind for tag in ("v2", "v3", "v4", "v5"))


BF16_VPU = _supports_bf16_vpu()


# ----------------------------------------------------------------------------
# Pallas kernel 1: generic fused 2-layer ReLU MLP, gridded over row tiles.
# Second-layer weights are pre-fused / block-diagonal / lane-padded to 128 at
# init, so one call serves several logical heads at once.  MXU operands are
# bf16 (weights stored bf16; activations cast in-kernel); accumulation is f32.
# ----------------------------------------------------------------------------
def _mlp2_relu_kernel(x_ref, w1_ref, b1_ref, w2_ref, b2_ref, o_ref):
    x = x_ref[...].astype(jnp.bfloat16)
    h = jnp.dot(x, w1_ref[...], preferred_element_type=jnp.float32)
    h = jnp.maximum(h + b1_ref[...], 0.0).astype(jnp.bfloat16)
    o = jnp.dot(h, w2_ref[...], preferred_element_type=jnp.float32) + b2_ref[...]
    o_ref[...] = o.astype(o_ref.dtype)


def fused_mlp2_relu(x, w1, b1, w2, b2, *, out_dtype=jnp.float32, tile_rows=1024):
    """One pallas_call for all rows of all molecules.  Output (M, 128), lane-dense."""
    x = x.astype(jnp.float32)
    M, K = x.shape
    K1 = w1.shape[1]
    NOUT = w2.shape[1]                       # pre-padded to LANE at init
    m8 = _round_up(max(M, 1), 8)
    # >= 2 grid steps whenever possible (so both v7x TensorCores get work), but
    # large tiles (default 1024 rows) to amortize the ~0.35us per-step overhead.
    tm = max(8, min(tile_rows, _round_up((m8 + 1) // 2, 8)))
    mp = _round_up(m8, tm)
    if mp != M:
        x = jnp.pad(x, ((0, mp - M), (0, 0)))
    out = pl.pallas_call(
        _mlp2_relu_kernel,
        out_shape=jax.ShapeDtypeStruct((mp, NOUT), out_dtype),
        grid=(mp // tm,),
        in_specs=[
            pl.BlockSpec((tm, K), lambda i: (i, 0)),
            pl.BlockSpec((K, K1), lambda i: (0, 0)),
            pl.BlockSpec((1, K1), lambda i: (0, 0)),
            pl.BlockSpec((K1, NOUT), lambda i: (0, 0)),
            pl.BlockSpec((1, NOUT), lambda i: (0, 0)),
        ],
        out_specs=pl.BlockSpec((tm, NOUT), lambda i: (i, 0)),
        compiler_params=pltpu.CompilerParams(
            dimension_semantics=("parallel",),
            vmem_limit_bytes=VMEM_LIMIT,
        ),
        cost_estimate=pl.CostEstimate(
            flops=2 * mp * (K * K1 + K1 * NOUT),
            transcendentals=0,
            bytes_accessed=4 * mp * (K + NOUT) + 2 * (K * K1 + K1 * NOUT),
        ),
    )(x, w1, b1, w2, b2)
    return out[:M]


# ----------------------------------------------------------------------------
# Pallas kernel 2: pairwise bond-existence scores WITH the BCE loss folded in.
#   score[i, j] = sum_k relu(A[i,k] + B[j,k]) * w2[k] + b2
#   out[b]     += sum over the valid N x N region of BCEWithLogits(score, adj)
# The (N*N, 2h) concat tensor and the (Bv, N, N) score tensor are never
# materialized.  Tiles are at most 128 x 128 (acc = 16 f32 vregs); the
# per-molecule grid axis is "parallel" (v7x core sharding), the row/col tile
# axes accumulate into the resident per-molecule output block ("arbitrary").
# ----------------------------------------------------------------------------
def _make_bond_if_bce_kernel(h_dim, tm, tn, use_bf16):
    def kernel(n_ref, a_ref, bmt_ref, tgt_ref, w_ref, o_ref):
        b = pl.program_id(0)
        r = pl.program_id(1)
        c = pl.program_id(2)

        @pl.when(jnp.logical_and(r == 0, c == 0))
        def _():
            o_ref[...] = jnp.zeros_like(o_ref)

        a = a_ref[0]                          # (tm, h)
        bmt = bmt_ref[0]                      # (h, tn)
        if use_bf16:                          # bf16 VPU math (v6e/v7x only)
            a = a.astype(jnp.bfloat16)
            bmt = bmt.astype(jnp.bfloat16)

        acc = jnp.zeros((tm, tn), jnp.float32)
        for k in range(h_dim):                # static unroll over the hidden dim
            wk = w_ref[k]
            if use_bf16:
                wk = wk.astype(jnp.bfloat16)
            term = jnp.maximum(a[:, k:k + 1] + bmt[k:k + 1, :], 0.0) * wk
            acc = acc + term.astype(jnp.float32)

        logits = acc + w_ref[h_dim]           # + layer-2 bias (out of the loop)
        tgt = tgt_ref[0]

        n = n_ref[b]
        row = jax.lax.broadcasted_iota(jnp.int32, (tm, tn), 0) + r * tm
        col = jax.lax.broadcasted_iota(jnp.int32, (tm, tn), 1) + c * tn
        valid = jnp.logical_and(row < n, col < n)

        bce = (jnp.maximum(logits, 0.0) - logits * tgt
               + jnp.log1p(jnp.exp(-jnp.abs(logits))))
        bce = jnp.where(valid, bce, 0.0)
        o_ref[...] += jnp.sum(bce, axis=0, keepdims=True)[None]

    return kernel


def bond_if_bce_sums(n_atoms, a_stack, bmt_stack, targets, w_vec):
    """Masked per-molecule sums of BCEWithLogits over the NxN bond scores.
    a_stack: (Bv, nr, h); bmt_stack: (Bv, h, nc); targets: (Bv, nr, nc);
    n_atoms: (Bv,) i32 (SMEM); w_vec: (h+1,) = [w2; b2] (SMEM).
    Returns (Bv, 1, 128) partial sums (sum everything per molecule)."""
    Bv, nr, h_dim = a_stack.shape
    nc = bmt_stack.shape[2]
    tm = nr if nr <= LANE else LANE
    tn = LANE
    kernel = _make_bond_if_bce_kernel(h_dim, tm, tn, BF16_VPU)
    return pl.pallas_call(
        kernel,
        out_shape=jax.ShapeDtypeStruct((Bv, 1, LANE), jnp.float32),
        grid=(Bv, nr // tm, nc // tn),
        in_specs=[
            pl.BlockSpec(memory_space=pltpu.MemorySpace.SMEM),        # n_atoms
            pl.BlockSpec((1, tm, h_dim), lambda b, r, c: (b, r, 0)),  # A row tile
            pl.BlockSpec((1, h_dim, tn), lambda b, r, c: (b, 0, c)),  # B^T col tile
            pl.BlockSpec((1, tm, tn), lambda b, r, c: (b, r, c)),     # adjacency
            pl.BlockSpec(memory_space=pltpu.MemorySpace.SMEM),        # [w2; b2]
        ],
        out_specs=pl.BlockSpec((1, 1, LANE), lambda b, r, c: (b, 0, 0)),
        compiler_params=pltpu.CompilerParams(
            dimension_semantics=("parallel", "arbitrary", "arbitrary"),
            vmem_limit_bytes=VMEM_LIMIT,
        ),
        cost_estimate=pl.CostEstimate(
            flops=4 * Bv * nr * nc * (h_dim + 2),
            transcendentals=2 * Bv * nr * nc,
            bytes_accessed=4 * Bv * (nr * h_dim + h_dim * nc + nr * nc + LANE),
        ),
    )(n_atoms, a_stack, bmt_stack, targets, w_vec)


# ----------------------------------------------------------------------------
# Elementwise loss pieces (per-molecule means are folded into precomputed
# weights and applied as one weighted sum over the flat batched tensors).
# ----------------------------------------------------------------------------
def bce_with_logits_elem(x, t):
    x = x.astype(jnp.float32)
    t = t.astype(jnp.float32)
    return jnp.maximum(x, 0.0) - x * t + jnp.log1p(jnp.exp(-jnp.abs(x)))


def cross_entropy_elem(logits, labels):
    logits = logits.astype(jnp.float32)
    lse = jax.nn.logsumexp(logits, axis=-1)
    picked = jnp.take_along_axis(logits, labels[:, None], axis=-1)[:, 0]
    return lse - picked


def smooth_l1_elem(d):
    ad = jnp.abs(d)
    return jnp.where(ad < 1.0, 0.5 * d * d, ad - 0.5)


def smooth_l1_mean(x, t):
    return jnp.mean(smooth_l1_elem(x.astype(jnp.float32) - t.astype(jnp.float32)))


def _softplus_mlp(x, p):
    # atom/bond count heads: (B, 32) @ (32, 8) -> softplus -> (8, 1).  Plain jnp on
    # purpose: a Pallas launch here is pure dispatch overhead.
    w1, b1, w2, b2 = p
    h = jax.nn.softplus(x.astype(jnp.float32) @ w1 + b1)
    return h @ w2 + b2


# ----------------------------------------------------------------------------
# Parameter construction (deterministic, synthetic) + one-time head fusion
# ----------------------------------------------------------------------------
def init_mlp(key, d_in, d_hidden, d_out):
    k1, k2, k3, k4 = jax.random.split(key, 4)
    s1 = 1.0 / jnp.sqrt(jnp.float32(d_in))
    s2 = 1.0 / jnp.sqrt(jnp.float32(d_hidden))
    w1 = jax.random.uniform(k1, (d_in, d_hidden), jnp.float32, -s1, s1)
    b1 = jax.random.uniform(k2, (d_hidden,), jnp.float32, -s1, s1)
    w2 = jax.random.uniform(k3, (d_hidden, d_out), jnp.float32, -s2, s2)
    b2 = jax.random.uniform(k4, (d_out,), jnp.float32, -s2, s2)
    return (w1, b1, w2, b2)


def init_params(key, h):
    names_shapes = {
        "bond_if_proj": (h, h, h),
        "bond_if_s": (2 * h, h, 1),
        "bond_type_s_sigma": (2 * h, h, 1),
        "bond_type_s_pi": (2 * h, h, 1),
        "bond_type_s_conjugate": (2 * h, h, 1),
        "atom_hybri_s_s": (h, h, 1),
        "atom_hybri_s_p": (h, h, 4),
        "atom_hybri_s_d": (h, h, 3),
        "atom_hybri_s_a": (h, h, 7),
        "atom_hybri_s_lonepair": (h, h, 7),
        "atom_num_s": (h, h // 4, 1),
        "bond_num_s": (h, h // 4, 1),
    }
    params = {}
    keys = jax.random.split(key, len(names_shapes))
    for k, (name, (di, dh, do)) in zip(keys, names_shapes.items()):
        params[name] = init_mlp(k, di, dh, do)
    return params


def fuse_params(params):
    """One-time fusion / lane-padding / bf16 cast of all head weights."""
    h = HIDDEN
    f = {}

    # ---- node heads: bond_if_proj + 5 atom-hybri heads + A/B projections ----
    wp1, bp1, wp2, bp2 = params["bond_if_proj"]
    heads = ["atom_hybri_s_s", "atom_hybri_s_p", "atom_hybri_s_d",
             "atom_hybri_s_a", "atom_hybri_s_lonepair"]
    node_w1 = jnp.concatenate([wp1] + [params[n][0] for n in heads], axis=1)   # (h, 6h)
    node_b1 = jnp.concatenate([bp1] + [params[n][1] for n in heads])[None, :]  # (1, 6h)

    wbi1, bbi1, wbi2, bbi2 = params["bond_if_s"]
    w_top, w_bot = wbi1[:h], wbi1[h:]          # concat(p_i, p_j) @ wbi1 split

    node_w2 = jnp.zeros((6 * h, LANE), jnp.float32)
    node_b2 = jnp.zeros((1, LANE), jnp.float32)
    # proj output -> cols [0, h)
    node_w2 = node_w2.at[0:h, 0:h].set(wp2)
    node_b2 = node_b2.at[0, 0:h].set(bp2)
    # hybri heads (block-diagonal layer-2) -> cols [h, h + 22)
    col = COL_HYB
    for g, n in enumerate(heads):
        w2g, b2g = params[n][2], params[n][3]
        og = w2g.shape[1]
        node_w2 = node_w2.at[(g + 1) * h:(g + 2) * h, col:col + og].set(w2g)
        node_b2 = node_b2.at[0, col:col + og].set(b2g)
        col += og
    assert col == COL_A
    # A = proj @ w_top -> cols [COL_A, COL_B);  B = proj @ w_bot + bbi1 -> [COL_B, COL_END)
    node_w2 = node_w2.at[0:h, COL_A:COL_B].set(wp2 @ w_top)
    node_b2 = node_b2.at[0, COL_A:COL_B].set(bp2 @ w_top)
    node_w2 = node_w2.at[0:h, COL_B:COL_END].set(wp2 @ w_bot)
    node_b2 = node_b2.at[0, COL_B:COL_END].set(bp2 @ w_bot + bbi1)
    f["node_w1"] = node_w1.astype(jnp.bfloat16)      # bf16 MXU operands
    f["node_b1"] = node_b1
    f["node_w2"] = node_w2.astype(jnp.bfloat16)
    f["node_b2"] = node_b2

    # ---- bond_if_s layer-2 scalars, packed for SMEM: [w2 (h); b2 (1)] ----
    f["bi_w2b2"] = jnp.concatenate([wbi2[:, 0], bbi2]).astype(jnp.float32)     # (h+1,)

    # ---- 3 bond-type heads sharing the (E, 2h) input ----
    bt_heads = ["bond_type_s_sigma", "bond_type_s_pi", "bond_type_s_conjugate"]
    bt_w1 = jnp.concatenate([params[n][0] for n in bt_heads], axis=1)          # (2h, 3h)
    bt_b1 = jnp.concatenate([params[n][1] for n in bt_heads])[None, :]         # (1, 3h)
    bt_w2 = jnp.zeros((3 * h, LANE), jnp.float32)
    bt_b2 = jnp.zeros((1, LANE), jnp.float32)
    for g, n in enumerate(bt_heads):
        bt_w2 = bt_w2.at[g * h:(g + 1) * h, g:g + 1].set(params[n][2])
        bt_b2 = bt_b2.at[0, g].set(params[n][3][0])
    f["bt_w1"] = bt_w1.astype(jnp.bfloat16)
    f["bt_b1"] = bt_b1
    f["bt_w2"] = bt_w2.astype(jnp.bfloat16)
    f["bt_b2"] = bt_b2

    # ---- count heads kept raw (plain jnp path) ----
    f["atom_num_s"] = params["atom_num_s"]
    f["bond_num_s"] = params["bond_num_s"]
    return f


# ----------------------------------------------------------------------------
# Model_decoder.forward  (== topo_pred summed over the loss tuple), jitted with
# static per-molecule sizes.  All per-molecule glue is precomputed (numpy) once
# per size signature and applied as batched gathers / scatters / weighted sums.
# ----------------------------------------------------------------------------
@functools.lru_cache(maxsize=None)
def _build_forward(sizes_atom, sizes_bond):
    B = len(sizes_atom)
    valid = tuple(e >= 1 for e in sizes_bond)
    vidx = [i for i in range(B) if valid[i]]
    mol_num = len(vidx)
    Ntot = int(sum(sizes_atom))

    noffs = np.zeros(B, np.int64)
    if B > 1:
        noffs[1:] = np.cumsum(np.asarray(sizes_atom))[:-1]

    if mol_num > 0:
        Etot = int(sum(sizes_bond[i] for i in vidx))
        nmax = max(sizes_atom[i] for i in vidx)
        nr = _round_up(nmax, 8) if nmax <= LANE else _round_up(nmax, LANE)
        nc = _round_up(nmax, LANE)
        n_valid = np.asarray([sizes_atom[i] for i in vidx], np.int32)
        # row/col gather indices into the flat per-atom tensor (clamped; padded
        # rows/cols are masked inside the kernel).
        a_idx = np.minimum(noffs[vidx][:, None] + np.arange(nr)[None, :],
                           Ntot - 1).astype(np.int32)
        b_idx = np.minimum(noffs[vidx][:, None] + np.arange(nc)[None, :],
                           Ntot - 1).astype(np.int32)
        # per-atom loss weights: valid[mol] / N_mol (per-molecule mean folded in)
        w_atom = np.zeros(Ntot, np.float32)
        for i in vidx:
            w_atom[noffs[i]:noffs[i] + sizes_atom[i]] = 1.0 / sizes_atom[i]
        # per-edge bookkeeping (valid molecules only, in vidx order)
        mol_e = np.concatenate([np.full(sizes_bond[i], vi, np.int32)
                                for vi, i in enumerate(vidx)])
        atom_off_e = np.concatenate([np.full(sizes_bond[i], noffs[i], np.int32)
                                     for i in vidx])
        w_edge = np.concatenate([np.full(sizes_bond[i], 1.0 / sizes_bond[i],
                                         np.float32) for i in vidx])
        # TODO(synk): torch SmoothL1Loss broadcasts the (E,1) pi prediction
        # against the (E,) target into an (E,E) mean; kept for parity with the
        # reference module (likely a bug there).
        w_pi = np.zeros((Etot, Etot), np.float32)
        off = 0
        for i in vidx:
            e = sizes_bond[i]
            w_pi[off:off + e, off:off + e] = 1.0 / float(e * e)
            off += e

    def fwd(fused, node_rep, super_rep, edge_index, edge_attr, x_nosuper):
        # ---- atom / bond count heads (Softplus MLPs, plain jnp) ----
        atom_num_pred = _softplus_mlp(super_rep, fused["atom_num_s"])[:, 0]
        bond_num_pred = _softplus_mlp(super_rep, fused["bond_num_s"])[:, 0]
        atom_num_loss = smooth_l1_mean(
            atom_num_pred, jnp.asarray(sizes_atom, jnp.float32)) / B
        bond_num_loss = smooth_l1_mean(
            bond_num_pred, jnp.asarray(sizes_bond, jnp.float32)) / B

        loss = atom_num_loss + bond_num_loss
        if mol_num == 0:
            return loss

        # ---- fused node-head kernel: one launch for every atom of every mol ----
        # TODO(synk): nn.Dropout(0.2) after bond_if_proj is stochastic; modeled as
        # eval-mode identity.
        x_all = jnp.concatenate(node_rep, axis=0)                    # (Ntot, h)
        node_out = fused_mlp2_relu(x_all, fused["node_w1"], fused["node_b1"],
                                   fused["node_w2"], fused["node_b2"])
        proj = node_out[:, 0:HIDDEN]
        hyb = node_out[:, COL_HYB:COL_A]

        # ---- per-atom hybridization losses, batched over all atoms ----
        x_ns = jnp.concatenate(x_nosuper, axis=0)                    # (Ntot, 7)
        w_a = jnp.asarray(w_atom)
        s_loss = jnp.sum(bce_with_logits_elem(hyb[:, 0], x_ns[:, 2]) * w_a)
        p_loss = jnp.sum(cross_entropy_elem(hyb[:, 1:5],
                                            x_ns[:, 3].astype(jnp.int32)) * w_a)
        d_loss = jnp.sum(cross_entropy_elem(hyb[:, 5:8],
                                            x_ns[:, 4].astype(jnp.int32)) * w_a)
        a_loss = jnp.sum(cross_entropy_elem(hyb[:, 8:15],
                                            x_ns[:, 5].astype(jnp.int32)) * w_a)
        lp_loss = jnp.sum(cross_entropy_elem(hyb[:, 15:22],
                                             x_ns[:, 6].astype(jnp.int32)) * w_a)

        # ---- fused bond-type kernel: one launch over all edges of all mols ----
        src_l = jnp.concatenate([edge_index[i][0] for i in vidx])
        dst_l = jnp.concatenate([edge_index[i][1] for i in vidx])
        src_g = src_l + jnp.asarray(atom_off_e)
        dst_g = dst_l + jnp.asarray(atom_off_e)
        bt_in = jnp.concatenate([proj[src_g], proj[dst_g]], axis=1)   # (Etot, 2h)
        bt_out = fused_mlp2_relu(bt_in, fused["bt_w1"], fused["bt_b1"],
                                 fused["bt_w2"], fused["bt_b2"],
                                 out_dtype=jnp.bfloat16)              # 3 live lanes

        ea = jnp.concatenate([edge_attr[i] for i in vidx],
                             axis=0).astype(jnp.float32)              # (Etot, 5)
        w_e = jnp.asarray(w_edge)
        sigma_loss = jnp.sum(
            bce_with_logits_elem(bt_out[:, 0].astype(jnp.float32), ea[:, 2]) * w_e)
        conj_loss = jnp.sum(
            bce_with_logits_elem(bt_out[:, 2].astype(jnp.float32), ea[:, 4]) * w_e)
        pi_diff = bt_out[:, 1:2].astype(jnp.float32) - ea[:, 3][None, :]   # (E, E)
        pi_loss = jnp.sum(smooth_l1_elem(pi_diff) * jnp.asarray(w_pi))

        # ---- bond existence: pairwise scores + BCE fused in one gridded kernel;
        # no (N*N, 2h) concat and no (Bv, N, N) score writeback ----
        a_stack = jnp.take(node_out[:, COL_A:COL_B], jnp.asarray(a_idx), axis=0)
        b_stack = jnp.take(node_out[:, COL_B:COL_END], jnp.asarray(b_idx), axis=0)
        bmt_stack = jnp.swapaxes(b_stack, 1, 2)                        # (Bv, h, nc)
        tgt = jnp.zeros((mol_num, nr, nc), jnp.float32).at[
            jnp.asarray(mol_e), src_l, dst_l].set(1.0)
        part = bond_if_bce_sums(jnp.asarray(n_valid), a_stack, bmt_stack,
                                tgt, fused["bi_w2b2"])
        n_f = jnp.asarray(n_valid, jnp.float32)
        bond_if_loss = jnp.sum(jnp.sum(part, axis=(1, 2)) / (n_f * n_f))

        loss = loss + (bond_if_loss + sigma_loss + pi_loss + conj_loss
                       + s_loss + p_loss + d_loss + a_loss + lp_loss) / mol_num
        return loss

    return jax.jit(fwd)


def model_decoder_forward(fused, mol_batch, node_rep, super_node_rep):
    sizes_atom = tuple(int(m["size_atom"]) for m in mol_batch)
    sizes_bond = tuple(int(m["size_bond"]) for m in mol_batch)
    fwd = _build_forward(sizes_atom, sizes_bond)
    return fwd(
        fused,
        tuple(node_rep),
        jnp.stack(super_node_rep, axis=0),
        tuple(m["edge_index"] for m in mol_batch),
        tuple(m["edge_attr"] for m in mol_batch),
        tuple(m["x_nosuper"] for m in mol_batch),
    )


# ----------------------------------------------------------------------------
# Main: deterministic synthetic molecules, run once, print KERNEL_OK
# ----------------------------------------------------------------------------
if __name__ == "__main__":
    key = jax.random.PRNGKey(0)
    k_param, k_data = jax.random.split(key)
    params = init_params(k_param, HIDDEN)
    fused = fuse_params(params)          # hoisted: fusion/padding/bf16 done once

    B, N, E, H = 2, 8, 12, HIDDEN        # 2 molecules, 8 atoms, 12 bonds each

    mol_batch, node_rep, super_node_rep = [], [], []
    dkeys = jax.random.split(k_data, B)
    for b in range(B):
        kk = jax.random.split(dkeys[b], 6)
        node_rep.append(jax.random.normal(kk[0], (N, H), jnp.float32))
        super_node_rep.append(jax.random.normal(kk[1], (H,), jnp.float32))
        edge_index = jax.random.randint(kk[2], (2, E), 0, N, jnp.int32)
        edge_attr = jnp.concatenate(
            [
                jax.random.normal(kk[3], (E, 2), jnp.float32),
                jax.random.randint(kk[3], (E, 1), 0, 2).astype(jnp.float32),  # sigma
                jax.random.uniform(kk[4], (E, 1), jnp.float32, 0.0, 2.0),      # pi
                jax.random.randint(kk[4], (E, 1), 0, 2).astype(jnp.float32),  # conj
            ],
            axis=1,
        )  # (E, 5)
        x_nosuper = jnp.stack(
            [
                jax.random.randint(kk[5], (N,), 0, 5).astype(jnp.float32),
                jax.random.randint(kk[5], (N,), 0, 5).astype(jnp.float32),
                jax.random.randint(kk[0], (N,), 0, 2).astype(jnp.float32),  # s (0/1)
                jax.random.randint(kk[1], (N,), 0, 4).astype(jnp.float32),  # p (4 cls)
                jax.random.randint(kk[2], (N,), 0, 3).astype(jnp.float32),  # d (3 cls)
                jax.random.randint(kk[3], (N,), 0, 7).astype(jnp.float32),  # a (7 cls)
                jax.random.randint(kk[4], (N,), 0, 7).astype(jnp.float32),  # lp (7 cls)
            ],
            axis=1,
        )  # (N, 7)
        mol_batch.append(
            dict(
                size_atom=N,
                size_bond=E,
                edge_index=edge_index,
                edge_attr=edge_attr,
                x_nosuper=x_nosuper,
            )
        )

    loss = model_decoder_forward(fused, mol_batch, node_rep, super_node_rep)
    loss = jax.block_until_ready(loss)
    assert jnp.isfinite(loss), "loss is not finite"
    print("KERNEL_OK")
</pallas_src>

<mosaic_0001>
module attributes {stable_mosaic.version = 11 : i64} {
  func.func @_mlp2_relu_kernel(%arg0: i32, %arg1: memref<8x32xf32, #tpu.memory_space<vmem>>, %arg2: memref<32x192xbf16, #tpu.memory_space<vmem>>, %arg3: memref<1x192xf32, #tpu.memory_space<vmem>>, %arg4: memref<192x128xbf16, #tpu.memory_space<vmem>>, %arg5: memref<1x128xf32, #tpu.memory_space<vmem>>, %arg6: memref<8x128xf32, #tpu.memory_space<vmem>>) attributes {dimension_semantics = [#tpu.dimension_semantics<parallel>], iteration_bounds = array<i64: 2>, scalar_prefetch = 0 : i64, scratch_operands = 0 : i64, tpu.core_type = #tpu.core_type<tc>, window_params = [{transform_indices = @transform_0, window_bounds = array<i64: 8, 32>}, {pipeline_mode = #tpu.pipeline_mode<synchronous>, transform_indices = @transform_1, window_bounds = array<i64: 32, 192>}, {pipeline_mode = #tpu.pipeline_mode<synchronous>, transform_indices = @transform_2, window_bounds = array<i64: 1, 192>}, {pipeline_mode = #tpu.pipeline_mode<synchronous>, transform_indices = @transform_3, window_bounds = array<i64: 192, 128>}, {pipeline_mode = #tpu.pipeline_mode<synchronous>, transform_indices = @transform_4, window_bounds = array<i64: 1, 128>}, {transform_indices = @transform_5, window_bounds = array<i64: 8, 128>}]} {
    %c0 = arith.constant 0 : index
    %c0_0 = arith.constant 0 : index
    %0 = vector.load %arg1[%c0, %c0_0] : memref<8x32xf32, #tpu.memory_space<vmem>>, vector<8x32xf32>
    %1 = arith.truncf %0 : vector<8x32xf32> to vector<8x32xbf16>
    %c0_1 = arith.constant 0 : index
    %c0_2 = arith.constant 0 : index
    %2 = vector.load %arg2[%c0_1, %c0_2] : memref<32x192xbf16, #tpu.memory_space<vmem>>, vector<32x192xbf16>
    %cst = arith.constant dense<0.000000e+00> : vector<8x192xf32>
    %3 = tpu.matmul %1, %2, %cst {dimension_numbers = #tpu.dot_dimension_numbers<[1], [0], [0], [1], [0, 0, 1, 1], [], []>} : vector<8x32xbf16>, vector<32x192xbf16>, vector<8x192xf32> -> vector<8x192xf32>
    %c0_3 = arith.constant 0 : index
    %c0_4 = arith.constant 0 : index
    %4 = vector.load %arg3[%c0_3, %c0_4] : memref<1x192xf32, #tpu.memory_space<vmem>>, vector<1x192xf32>
    %5 = vector.broadcast %4 : vector<1x192xf32> to vector<8x192xf32>
    %6 = arith.addf %3, %5 : vector<8x192xf32>
    %cst_5 = arith.constant 0.000000e+00 : f32
    %7 = vector.broadcast %cst_5 : f32 to vector<8x192xf32>
    %8 = arith.maximumf %6, %7 : vector<8x192xf32>
    %9 = arith.truncf %8 : vector<8x192xf32> to vector<8x192xbf16>
    %c0_6 = arith.constant 0 : index
    %c0_7 = arith.constant 0 : index
    %10 = vector.load %arg4[%c0_6, %c0_7] : memref<192x128xbf16, #tpu.memory_space<vmem>>, vector<192x128xbf16>
    %cst_8 = arith.constant dense<0.000000e+00> : vector<8x128xf32>
    %11 = tpu.matmul %9, %10, %cst_8 {dimension_numbers = #tpu.dot_dimension_numbers<[1], [0], [0], [1], [0, 0, 1, 1], [], []>} : vector<8x192xbf16>, vector<192x128xbf16>, vector<8x128xf32> -> vector<8x128xf32>
    %c0_9 = arith.constant 0 : index
    %c0_10 = arith.constant 0 : index
    %12 = vector.load %arg5[%c0_9, %c0_10] : memref<1x128xf32, #tpu.memory_space<vmem>>, vector<1x128xf32>
    %13 = vector.broadcast %12 : vector<1x128xf32> to vector<8x128xf32>
    %14 = arith.addf %11, %13 : vector<8x128xf32>
    %c0_11 = arith.constant 0 : index
    %c0_12 = arith.constant 0 : index
    %15 = vector.load %arg6[%c0_11, %c0_12] : memref<8x128xf32, #tpu.memory_space<vmem>>, vector<8x128xf32>
    tpu.vector_store %arg6[%c0_11, %c0_12], %14 {strides = array<i32>} : memref<8x128xf32, #tpu.memory_space<vmem>>, vector<8x128xf32>,
    return
  }
  func.func @transform_0(%arg0: i32) -> (i32, i32) {
    %c0_i32 = arith.constant 0 : i32
    %c0_i32_0 = arith.constant 0 : i32
    return %arg0, %c0_i32 : i32, i32
  }
  func.func @transform_1(%arg0: i32) -> (i32, i32) {
    %c0_i32 = arith.constant 0 : i32
    %c0_i32_0 = arith.constant 0 : i32
    %c0_i32_1 = arith.constant 0 : i32
    return %c0_i32, %c0_i32_0 : i32, i32
  }
  func.func @transform_2(%arg0: i32) -> (i32, i32) {
    %c0_i32 = arith.constant 0 : i32
    %c0_i32_0 = arith.constant 0 : i32
    %c0_i32_1 = arith.constant 0 : i32
    return %c0_i32, %c0_i32_0 : i32, i32
  }
  func.func @transform_3(%arg0: i32) -> (i32, i32) {
    %c0_i32 = arith.constant 0 : i32
    %c0_i32_0 = arith.constant 0 : i32
    %c0_i32_1 = arith.constant 0 : i32
    return %c0_i32, %c0_i32_0 : i32, i32
  }
  func.func @transform_4(%arg0: i32) -> (i32, i32) {
    %c0_i32 = arith.constant 0 : i32
    %c0_i32_0 = arith.constant 0 : i32
    %c0_i32_1 = arith.constant 0 : i32
    return %c0_i32, %c0_i32_0 : i32, i32
  }
  func.func @transform_5(%arg0: i32) -> (i32, i32) {
    %c0_i32 = arith.constant 0 : i32
    %c0_i32_0 = arith.constant 0 : i32
    return %arg0, %c0_i32 : i32, i32
  }
}

module attributes {stable_mosaic.version = 11 : i64} {
  func.func @_mlp2_relu_kernel(%arg0: i32, %arg1: memref<16x64xf32, #tpu.memory_space<vmem>>, %arg2: memref<64x96xbf16, #tpu.memory_space<vmem>>, %arg3: memref<1x96xf32, #tpu.memory_space<vmem>>, %arg4: memref<96x128xbf16, #tpu.memory_space<vmem>>, %arg5: memref<1x128xf32, #tpu.memory_space<vmem>>, %arg6: memref<16x128xbf16, #tpu.memory_space<vmem>>) attributes {dimension_semantics = [#tpu.dimension_semantics<parallel>], iteration_bounds = array<i64: 2>, scalar_prefetch = 0 : i64, scratch_operands = 0 : i64, tpu.core_type = #tpu.core_type<tc>, window_params = [{transform_indices = @transform_0, window_bounds = array<i64: 16, 64>}, {pipeline_mode = #tpu.pipeline_mode<synchronous>, transform_indices = @transform_1, window_bounds = array<i64: 64, 96>}, {pipeline_mode = #tpu.pipeline_mode<synchronous>, transform_indices = @transform_2, window_bounds = array<i64: 1, 96>}, {pipeline_mode = #tpu.pipeline_mode<synchronous>, transform_indices = @transform_3, window_bounds = array<i64: 96, 128>}, {pipeline_mode = #tpu.pipeline_mode<synchronous>, transform_indices = @transform_4, window_bounds = array<i64: 1, 128>}, {transform_indices = @transform_5, window_bounds = array<i64: 16, 128>}]} {
    %c0 = arith.constant 0 : index
    %c0_0 = arith.constant 0 : index
    %0 = vector.load %arg1[%c0, %c0_0] : memref<16x64xf32, #tpu.memory_space<vmem>>, vector<16x64xf32>
    %1 = arith.truncf %0 : vector<16x64xf32> to vector<16x64xbf16>
    %c0_1 = arith.constant 0 : index
    %c0_2 = arith.constant 0 : index
    %2 = vector.load %arg2[%c0_1, %c0_2] : memref<64x96xbf16, #tpu.memory_space<vmem>>, vector<64x96xbf16>
    %cst = arith.constant dense<0.000000e+00> : vector<16x96xf32>
    %3 = tpu.matmul %1, %2, %cst {dimension_numbers = #tpu.dot_dimension_numbers<[1], [0], [0], [1], [0, 0, 1, 1], [], []>} : vector<16x64xbf16>, vector<64x96xbf16>, vector<16x96xf32> -> vector<16x96xf32>
    %c0_3 = arith.constant 0 : index
    %c0_4 = arith.constant 0 : index
    %4 = vector.load %arg3[%c0_3, %c0_4] : memref<1x96xf32, #tpu.memory_space<vmem>>, vector<1x96xf32>
    %5 = vector.broadcast %4 : vector<1x96xf32> to vector<16x96xf32>
    %6 = arith.addf %3, %5 : vector<16x96xf32>
    %cst_5 = arith.constant 0.000000e+00 : f32
    %7 = vector.broadcast %cst_5 : f32 to vector<16x96xf32>
    %8 = arith.maximumf %6, %7 : vector<16x96xf32>
    %9 = arith.truncf %8 : vector<16x96xf32> to vector<16x96xbf16>
    %c0_6 = arith.constant 0 : index
    %c0_7 = arith.constant 0 : index
    %10 = vector.load %arg4[%c0_6, %c0_7] : memref<96x128xbf16, #tpu.memory_space<vmem>>, vector<96x128xbf16>
    %cst_8 = arith.constant dense<0.000000e+00> : vector<16x128xf32>
    %11 = tpu.matmul %9, %10, %cst_8 {dimension_numbers = #tpu.dot_dimension_numbers<[1], [0], [0], [1], [0, 0, 1, 1], [], []>} : vector<16x96xbf16>, vector<96x128xbf16>, vector<16x128xf32> -> vector<16x128xf32>
    %c0_9 = arith.constant 0 : index
    %c0_10 = arith.constant 0 : index
    %12 = vector.load %arg5[%c0_9, %c0_10] : memref<1x128xf32, #tpu.memory_space<vmem>>, vector<1x128xf32>
    %13 = vector.broadcast %12 : vector<1x128xf32> to vector<16x128xf32>
    %14 = arith.addf %11, %13 : vector<16x128xf32>
    %15 = arith.truncf %14 : vector<16x128xf32> to vector<16x128xbf16>
    %c0_11 = arith.constant 0 : index
    %c0_12 = arith.constant 0 : index
    %16 = vector.load %arg6[%c0_11, %c0_12] : memref<16x128xbf16, #tpu.memory_space<vmem>>, vector<16x128xbf16>
    tpu.vector_store %arg6[%c0_11, %c0_12], %15 {strides = array<i32>} : memref<16x128xbf16, #tpu.memory_space<vmem>>, vector<16x128xbf16>,
    return
  }
  func.func @transform_0(%arg0: i32) -> (i32, i32) {
    %c0_i32 = arith.constant 0 : i32
    %c0_i32_0 = arith.constant 0 : i32
    return %arg0, %c0_i32 : i32, i32
  }
  func.func @transform_1(%arg0: i32) -> (i32, i32) {
    %c0_i32 = arith.constant 0 : i32
    %c0_i32_0 = arith.constant 0 : i32
    %c0_i32_1 = arith.constant 0 : i32
    return %c0_i32, %c0_i32_0 : i32, i32
  }
  func.func @transform_2(%arg0: i32) -> (i32, i32) {
    %c0_i32 = arith.constant 0 : i32
    %c0_i32_0 = arith.constant 0 : i32
    %c0_i32_1 = arith.constant 0 : i32
    return %c0_i32, %c0_i32_0 : i32, i32
  }
  func.func @transform_3(%arg0: i32) -> (i32, i32) {
    %c0_i32 = arith.constant 0 : i32
    %c0_i32_0 = arith.constant 0 : i32
    %c0_i32_1 = arith.constant 0 : i32
    return %c0_i32, %c0_i32_0 : i32, i32
  }
  func.func @transform_4(%arg0: i32) -> (i32, i32) {
    %c0_i32 = arith.constant 0 : i32
    %c0_i32_0 = arith.constant 0 : i32
    %c0_i32_1 = arith.constant 0 : i32
    return %c0_i32, %c0_i32_0 : i32, i32
  }
  func.func @transform_5(%arg0: i32) -> (i32, i32) {
    %c0_i32 = arith.constant 0 : i32
    %c0_i32_0 = arith.constant 0 : i32
    return %arg0, %c0_i32 : i32, i32
  }
}

module attributes {stable_mosaic.version = 11 : i64} {
  func.func @kernel(%arg0: i32, %arg1: i32, %arg2: i32, %arg3: memref<2xi32, #tpu.memory_space<smem>>, %arg4: memref<1x8x32xf32, #tpu.memory_space<vmem>>, %arg5: memref<1x32x128xf32, #tpu.memory_space<vmem>>, %arg6: memref<1x8x128xf32, #tpu.memory_space<vmem>>, %arg7: memref<33xf32, #tpu.memory_space<smem>>, %arg8: memref<1x1x128xf32, #tpu.memory_space<vmem>>) attributes {dimension_semantics = [#tpu.dimension_semantics<parallel>, #tpu.dimension_semantics<arbitrary>, #tpu.dimension_semantics<arbitrary>], iteration_bounds = array<i64: 2, 1, 1>, scalar_prefetch = 0 : i64, scratch_operands = 0 : i64, tpu.core_type = #tpu.core_type<tc>, window_params = [{transform_indices = @transform_0, window_bounds = array<i64: 2>}, {transform_indices = @transform_1, window_bounds = array<i64: 1, 8, 32>}, {transform_indices = @transform_2, window_bounds = array<i64: 1, 32, 128>}, {transform_indices = @transform_3, window_bounds = array<i64: 1, 8, 128>}, {transform_indices = @transform_4, window_bounds = array<i64: 33>}, {transform_indices = @transform_5, window_bounds = array<i64: 1, 1, 128>}]} {
    %c0_i32 = arith.constant 0 : i32
    %0 = arith.cmpi eq, %arg1, %c0_i32 : i32
    %c0_i32_0 = arith.constant 0 : i32
    %1 = arith.cmpi eq, %arg2, %c0_i32_0 : i32
    %2 = arith.andi %0, %1 : i1
    %3 = arith.extui %2 : i1 to i32
    %c0_i32_1 = arith.constant 0 : i32
    %4 = arith.cmpi ne, %3, %c0_i32_1 : i32
    scf.if %4 {
      %cst_53 = arith.constant 0.000000e+00 : f32
      %466 = vector.broadcast %cst_53 : f32 to vector<1x1x128xf32>
      %c0_54 = arith.constant 0 : index
      %c0_55 = arith.constant 0 : index
      %c0_56 = arith.constant 0 : index
      %467 = vector.load %arg8[%c0_54, %c0_55, %c0_56] : memref<1x1x128xf32, #tpu.memory_space<vmem>>, vector<1x1x128xf32>
      tpu.vector_store %arg8[%c0_54, %c0_55, %c0_56], %466 {strides = array<i32>} : memref<1x1x128xf32, #tpu.memory_space<vmem>>, vector<1x1x128xf32>,
    } else {
    }
    %c0 = arith.constant 0 : index
    %c0_2 = arith.constant 0 : index
    %c0_3 = arith.constant 0 : index
    %5 = vector.load %arg4[%c0, %c0_2, %c0_3] : memref<1x8x32xf32, #tpu.memory_space<vmem>>, vector<1x8x32xf32>
    %6 = vector.shape_cast %5 : vector<1x8x32xf32> to vector<8x32xf32>
    %c0_4 = arith.constant 0 : index
    %c0_5 = arith.constant 0 : index
    %c0_6 = arith.constant 0 : index
    %7 = vector.load %arg5[%c0_4, %c0_5, %c0_6] : memref<1x32x128xf32, #tpu.memory_space<vmem>>, vector<1x32x128xf32>
    %8 = vector.shape_cast %7 : vector<1x32x128xf32> to vector<32x128xf32>
    %9 = arith.truncf %6 : vector<8x32xf32> to vector<8x32xbf16>
    %10 = arith.truncf %8 : vector<32x128xf32> to vector<32x128xbf16>
    %cst = arith.constant 0.000000e+00 : f32
    %11 = vector.broadcast %cst : f32 to vector<8x128xf32>
    %c0_7 = arith.constant 0 : index
    %12 = memref.load %arg7[%c0_7] : memref<33xf32, #tpu.memory_space<smem>>
    %13 = arith.truncf %12 : f32 to bf16
    %14 = vector.extract_strided_slice %9 {offsets = [0, 0], sizes = [8, 1], strides = [1, 1]} : vector<8x32xbf16> to vector<8x1xbf16>
    %15 = vector.extract_strided_slice %10 {offsets = [0, 0], sizes = [1, 128], strides = [1, 1]} : vector<32x128xbf16> to vector<1x128xbf16>
    %16 = vector.broadcast %14 : vector<8x1xbf16> to vector<8x128xbf16>
    %17 = vector.broadcast %15 : vector<1x128xbf16> to vector<8x128xbf16>
    %18 = arith.addf %16, %17 : vector<8x128xbf16>
    %cst_8 = arith.constant 0.000000e+00 : bf16
    %19 = vector.broadcast %cst_8 : bf16 to vector<8x128xbf16>
    %20 = arith.maximumf %18, %19 : vector<8x128xbf16>
    %21 = vector.broadcast %13 : bf16 to vector<8x128xbf16>
    %22 = arith.mulf %20, %21 : vector<8x128xbf16>
    %23 = arith.extf %22 : vector<8x128xbf16> to vector<8x128xf32>
    %24 = arith.addf %11, %23 : vector<8x128xf32>
    %c1 = arith.constant 1 : index
    %25 = memref.load %arg7[%c1] : memref<33xf32, #tpu.memory_space<smem>>
    %26 = arith.truncf %25 : f32 to bf16
    %27 = vector.extract_strided_slice %9 {offsets = [0, 1], sizes = [8, 1], strides = [1, 1]} : vector<8x32xbf16> to vector<8x1xbf16>
    %28 = vector.extract_strided_slice %10 {offsets = [1, 0], sizes = [1, 128], strides = [1, 1]} : vector<32x128xbf16> to vector<1x128xbf16>
    %29 = vector.broadcast %27 : vector<8x1xbf16> to vector<8x128xbf16>
    %30 = vector.broadcast %28 : vector<1x128xbf16> to vector<8x128xbf16>
    %31 = arith.addf %29, %30 : vector<8x128xbf16>
    %cst_9 = arith.constant 0.000000e+00 : bf16
    %32 = vector.broadcast %cst_9 : bf16 to vector<8x128xbf16>
    %33 = arith.maximumf %31, %32 : vector<8x128xbf16>
    %34 = vector.broadcast %26 : bf16 to vector<8x128xbf16>
    %35 = arith.mulf %33, %34 : vector<8x128xbf16>
    %36 = arith.extf %35 : vector<8x128xbf16> to vector<8x128xf32>
    %37 = arith.addf %24, %36 : vector<8x128xf32>
    %c2 = arith.constant 2 : index
    %38 = memref.load %arg7[%c2] : memref<33xf32, #tpu.memory_space<smem>>
    %39 = arith.truncf %38 : f32 to bf16
    %40 = vector.extract_strided_slice %9 {offsets = [0, 2], sizes = [8, 1], strides = [1, 1]} : vector<8x32xbf16> to vector<8x1xbf16>
    %41 = vector.extract_strided_slice %10 {offsets = [2, 0], sizes = [1, 128], strides = [1, 1]} : vector<32x128xbf16> to vector<1x128xbf16>
    %42 = vector.broadcast %40 : vector<8x1xbf16> to vector<8x128xbf16>
    %43 = vector.broadcast %41 : vector<1x128xbf16> to vector<8x128xbf16>
    %44 = arith.addf %42, %43 : vector<8x128xbf16>
    %cst_10 = arith.constant 0.000000e+00 : bf16
    %45 = vector.broadcast %cst_10 : bf16 to vector<8x128xbf16>
    %46 = arith.maximumf %44, %45 : vector<8x128xbf16>
    %47 = vector.broadcast %39 : bf16 to vector<8x128xbf16>
    %48 = arith.mulf %46, %47 : vector<8x128xbf16>
    %49 = arith.extf %48 : vector<8x128xbf16> to vector<8x128xf32>
    %50 = arith.addf %37, %49 : vector<8x128xf32>
    %c3 = arith.constant 3 : index
    %51 = memref.load %arg7[%c3] : memref<33xf32, #tpu.memory_space<smem>>
    %52 = arith.truncf %51 : f32 to bf16
    %53 = vector.extract_strided_slice %9 {offsets = [0, 3], sizes = [8, 1], strides = [1, 1]} : vector<8x32xbf16> to vector<8x1xbf16>
    %54 = vector.extract_strided_slice %10 {offsets = [3, 0], sizes = [1, 128], strides = [1, 1]} : vector<32x128xbf16> to vector<1x128xbf16>
    %55 = vector.broadcast %53 : vector<8x1xbf16> to vector<8x128xbf16>
    %56 = vector.broadcast %54 : vector<1x128xbf16> to vector<8x128xbf16>
    %57 = arith.addf %55, %56 : vector<8x128xbf16>
    %cst_11 = arith.constant 0.000000e+00 : bf16
    %58 = vector.broadcast %cst_11 : bf16 to vector<8x128xbf16>
    %59 = arith.maximumf %57, %58 : vector<8x128xbf16>
    %60 = vector.broadcast %52 : bf16 to vector<8x128xbf16>
    %61 = arith.mulf %59, %60 : vector<8x128xbf16>
    %62 = arith.extf %61 : vector<8x128xbf16> to vector<8x128xf32>
    %63 = arith.addf %50, %62 : vector<8x128xf32>
    %c4 = arith.constant 4 : index
    %64 = memref.load %arg7[%c4] : memref<33xf32, #tpu.memory_space<smem>>
    %65 = arith.truncf %64 : f32 to bf16
    %66 = vector.extract_strided_slice %9 {offsets = [0, 4], sizes = [8, 1], strides = [1, 1]} : vector<8x32xbf16> to vector<8x1xbf16>
    %67 = vector.extract_strided_slice %10 {offsets = [4, 0], sizes = [1, 128], strides = [1, 1]} : vector<32x128xbf16> to vector<1x128xbf16>
    %68 = vector.broadcast %66 : vector<8x1xbf16> to vector<8x128xbf16>
    %69 = vector.broadcast %67 : vector<1x128xbf16> to vector<8x128xbf16>
    %70 = arith.addf %68, %69 : vector<8x128xbf16>
    %cst_12 = arith.constant 0.000000e+00 : bf16
    %71 = vector.broadcast %cst_12 : bf16 to vector<8x128xbf16>
    %72 = arith.maximumf %70, %71 : vector<8x128xbf16>
    %73 = vector.broadcast %65 : bf16 to vector<8x128xbf16>
    %74 = arith.mulf %72, %73 : vector<8x128xbf16>
    %75 = arith.extf %74 : vector<8x128xbf16> to vector<8x128xf32>
    %76 = arith.addf %63, %75 : vector<8x128xf32>
    %c5 = arith.constant 5 : index
    %77 = memref.load %arg7[%c5] : memref<33xf32, #tpu.memory_space<smem>>
    %78 = arith.truncf %77 : f32 to bf16
    %79 = vector.extract_strided_slice %9 {offsets = [0, 5], sizes = [8, 1], strides = [1, 1]} : vector<8x32xbf16> to vector<8x1xbf16>
    %80 = vector.extract_strided_slice %10 {offsets = [5, 0], sizes = [1, 128], strides = [1, 1]} : vector<32x128xbf16> to vector<1x128xbf16>
    %81 = vector.broadcast %79 : vector<8x1xbf16> to vector<8x128xbf16>
    %82 = vector.broadcast %80 : vector<1x128xbf16> to vector<8x128xbf16>
    %83 = arith.addf %81, %82 : vector<8x128xbf16>
    %cst_13 = arith.constant 0.000000e+00 : bf16
    %84 = vector.broadcast %cst_13 : bf16 to vector<8x128xbf16>
    %85 = arith.maximumf %83, %84 : vector<8x128xbf16>
    %86 = vector.broadcast %78 : bf16 to vector<8x128xbf16>
    %87 = arith.mulf %85, %86 : vector<8x128xbf16>
    %88 = arith.extf %87 : vector<8x128xbf16> to vector<8x128xf32>
    %89 = arith.addf %76, %88 : vector<8x128xf32>
    %c6 = arith.constant 6 : index
    %90 = memref.load %arg7[%c6] : memref<33xf32, #tpu.memory_space<smem>>
    %91 = arith.truncf %90 : f32 to bf16
    %92 = vector.extract_strided_slice %9 {offsets = [0, 6], sizes = [8, 1], strides = [1, 1]} : vector<8x32xbf16> to vector<8x1xbf16>
    %93 = vector.extract_strided_slice %10 {offsets = [6, 0], sizes = [1, 128], strides = [1, 1]} : vector<32x128xbf16> to vector<1x128xbf16>
    %94 = vector.broadcast %92 : vector<8x1xbf16> to vector<8x128xbf16>
    %95 = vector.broadcast %93 : vector<1x128xbf16> to vector<8x128xbf16>
    %96 = arith.addf %94, %95 : vector<8x128xbf16>
    %cst_14 = arith.constant 0.000000e+00 : bf16
    %97 = vector.broadcast %cst_14 : bf16 to vector<8x128xbf16>
    %98 = arith.maximumf %96, %97 : vector<8x128xbf16>
    %99 = vector.broadcast %91 : bf16 to vector<8x128xbf16>
    %100 = arith.mulf %98, %99 : vector<8x128xbf16>
    %101 = arith.extf %100 : vector<8x128xbf16> to vector<8x128xf32>
    %102 = arith.addf %89, %101 : vector<8x128xf32>
    %c7 = arith.constant 7 : index
    %103 = memref.load %arg7[%c7] : memref<33xf32, #tpu.memory_space<smem>>
    %104 = arith.truncf %103 : f32 to bf16
    %105 = vector.extract_strided_slice %9 {offsets = [0, 7], sizes = [8, 1], strides = [1, 1]} : vector<8x32xbf16> to vector<8x1xbf16>
    %106 = vector.extract_strided_slice %10 {offsets = [7, 0], sizes = [1, 128], strides = [1, 1]} : vector<32x128xbf16> to vector<1x128xbf16>
    %107 = vector.broadcast %105 : vector<8x1xbf16> to vector<8x128xbf16>
    %108 = vector.broadcast %106 : vector<1x128xbf16> to vector<8x128xbf16>
    %109 = arith.addf %107, %108 : vector<8x128xbf16>
    %cst_15 = arith.constant 0.000000e+00 : bf16
    %110 = vector.broadcast %cst_15 : bf16 to vector<8x128xbf16>
    %111 = arith.maximumf %109, %110 : vector<8x128xbf16>
    %112 = vector.broadcast %104 : bf16 to vector<8x128xbf16>
    %113 = arith.mulf %111, %112 : vector<8x128xbf16>
    %114 = arith.extf %113 : vector<8x128xbf16> to vector<8x128xf32>
    %115 = arith.addf %102, %114 : vector<8x128xf32>
    %c8 = arith.constant 8 : index
    %116 = memref.load %arg7[%c8] : memref<33xf32, #tpu.memory_space<smem>>
    %117 = arith.truncf %116 : f32 to bf16
    %118 = vector.extract_strided_slice %9 {offsets = [0, 8], sizes = [8, 1], strides = [1, 1]} : vector<8x32xbf16> to vector<8x1xbf16>
    %119 = vector.extract_strided_slice %10 {offsets = [8, 0], sizes = [1, 128], strides = [1, 1]} : vector<32x128xbf16> to vector<1x128xbf16>
    %120 = vector.broadcast %118 : vector<8x1xbf16> to vector<8x128xbf16>
    %121 = vector.broadcast %119 : vector<1x128xbf16> to vector<8x128xbf16>
    %122 = arith.addf %120, %121 : vector<8x128xbf16>
    %cst_16 = arith.constant 0.000000e+00 : bf16
    %123 = vector.broadcast %cst_16 : bf16 to vector<8x128xbf16>
    %124 = arith.maximumf %122, %123 : vector<8x128xbf16>
    %125 = vector.broadcast %117 : bf16 to vector<8x128xbf16>
    %126 = arith.mulf %124, %125 : vector<8x128xbf16>
    %127 = arith.extf %126 : vector<8x128xbf16> to vector<8x128xf32>
    %128 = arith.addf %115, %127 : vector<8x128xf32>
    %c9 = arith.constant 9 : index
    %129 = memref.load %arg7[%c9] : memref<33xf32, #tpu.memory_space<smem>>
    %130 = arith.truncf %129 : f32 to bf16
    %131 = vector.extract_strided_slice %9 {offsets = [0, 9], sizes = [8, 1], strides = [1, 1]} : vector<8x32xbf16> to vector<8x1xbf16>
    %132 = vector.extract_strided_slice %10 {offsets = [9, 0], sizes = [1, 128], strides = [1, 1]} : vector<32x128xbf16> to vector<1x128xbf16>
    %133 = vector.broadcast %131 : vector<8x1xbf16> to vector<8x128xbf16>
    %134 = vector.broadcast %132 : vector<1x128xbf16> to vector<8x128xbf16>
    %135 = arith.addf %133, %134 : vector<8x128xbf16>
    %cst_17 = arith.constant 0.000000e+00 : bf16
    %136 = vector.broadcast %cst_17 : bf16 to vector<8x128xbf16>
    %137 = arith.maximumf %135, %136 : vector<8x128xbf16>
    %138 = vector.broadcast %130 : bf16 to vector<8x128xbf16>
    %139 = arith.mulf %137, %138 : vector<8x128xbf16>
    %140 = arith.extf %139 : vector<8x128xbf16> to vector<8x128xf32>
    %141 = arith.addf %128, %140 : vector<8x128xf32>
    %c10 = arith.constant 10 : index
    %142 = memref.load %arg7[%c10] : memref<33xf32, #tpu.memory_space<smem>>
    %143 = arith.truncf %142 : f32 to bf16
    %144 = vector.extract_strided_slice %9 {offsets = [0, 10], sizes = [8, 1], strides = [1, 1]} : vector<8x32xbf16> to vector<8x1xbf16>
    %145 = vector.extract_strided_slice %10 {offsets = [10, 0], sizes = [1, 128], strides = [1, 1]} : vector<32x128xbf16> to vector<1x128xbf16>
    %146 = vector.broadcast %144 : vector<8x1xbf16> to vector<8x128xbf16>
    %147 = vector.broadcast %145 : vector<1x128xbf16> to vector<8x128xbf16>
    %148 = arith.addf %146, %147 : vector<8x128xbf16>
    %cst_18 = arith.constant 0.000000e+00 : bf16
    %149 = vector.broadcast %cst_18 : bf16 to vector<8x128xbf16>
    %150 = arith.maximumf %148, %149 : vector<8x128xbf16>
    %151 = vector.broadcast %143 : bf16 to vector<8x128xbf16>
    %152 = arith.mulf %150, %151 : vector<8x128xbf16>
    %153 = arith.extf %152 : vector<8x128xbf16> to vector<8x128xf32>
    %154 = arith.addf %141, %153 : vector<8x128xf32>
    %c11 = arith.constant 11 : index
    %155 = memref.load %arg7[%c11] : memref<33xf32, #tpu.memory_space<smem>>
    %156 = arith.truncf %155 : f32 to bf16
    %157 = vector.extract_strided_slice %9 {offsets = [0, 11], sizes = [8, 1], strides = [1, 1]} : vector<8x32xbf16> to vector<8x1xbf16>
    %158 = vector.extract_strided_slice %10 {offsets = [11, 0], sizes = [1, 128], strides = [1, 1]} : vector<32x128xbf16> to vector<1x128xbf16>
    %159 = vector.broadcast %157 : vector<8x1xbf16> to vector<8x128xbf16>
    %160 = vector.broadcast %158 : vector<1x128xbf16> to vector<8x128xbf16>
    %161 = arith.addf %159, %160 : vector<8x128xbf16>
    %cst_19 = arith.constant 0.000000e+00 : bf16
    %162 = vector.broadcast %cst_19 : bf16 to vector<8x128xbf16>
    %163 = arith.maximumf %161, %162 : vector<8x128xbf16>
    %164 = vector.broadcast %156 : bf16 to vector<8x128xbf16>
    %165 = arith.mulf %163, %164 : vector<8x128xbf16>
    %166 = arith.extf %165 : vector<8x128xbf16> to vector<8x128xf32>
    %167 = arith.addf %154, %166 : vector<8x128xf32>
    %c12 = arith.constant 12 : index
    %168 = memref.load %arg7[%c12] : memref<33xf32, #tpu.memory_space<smem>>
    %169 = arith.truncf %168 : f32 to bf16
    %170 = vector.extract_strided_slice %9 {offsets = [0, 12], sizes = [8, 1], strides = [1, 1]} : vector<8x32xbf16> to vector<8x1xbf16>
    %171 = vector.extract_strided_slice %10 {offsets = [12, 0], sizes = [1, 128], strides = [1, 1]} : vector<32x128xbf16> to vector<1x128xbf16>
    %172 = vector.broadcast %170 : vector<8x1xbf16> to vector<8x128xbf16>
    %173 = vector.broadcast %171 : vector<1x128xbf16> to vector<8x128xbf16>
    %174 = arith.addf %172, %173 : vector<8x128xbf16>
    %cst_20 = arith.constant 0.000000e+00 : bf16
    %175 = vector.broadcast %cst_20 : bf16 to vector<8x128xbf16>
    %176 = arith.maximumf %174, %175 : vector<8x128xbf16>
    %177 = vector.broadcast %169 : bf16 to vector<8x128xbf16>
    %178 = arith.mulf %176, %177 : vector<8x128xbf16>
    %179 = arith.extf %178 : vector<8x128xbf16> to vector<8x128xf32>
    %180 = arith.addf %167, %179 : vector<8x128xf32>
    %c13 = arith.constant 13 : index
    %181 = memref.load %arg7[%c13] : memref<33xf32, #tpu.memory_space<smem>>
    %182 = arith.truncf %181 : f32 to bf16
    %183 = vector.extract_strided_slice %9 {offsets = [0, 13], sizes = [8, 1], strides = [1, 1]} : vector<8x32xbf16> to vector<8x1xbf16>
    %184 = vector.extract_strided_slice %10 {offsets = [13, 0], sizes = [1, 128], strides = [1, 1]} : vector<32x128xbf16> to vector<1x128xbf16>
    %185 = vector.broadcast %183 : vector<8x1xbf16> to vector<8x128xbf16>
    %186 = vector.broadcast %184 : vector<1x128xbf16> to vector<8x128xbf16>
    %187 = arith.addf %185, %186 : vector<8x128xbf16>
    %cst_21 = arith.constant 0.000000e+00 : bf16
    %188 = vector.broadcast %cst_21 : bf16 to vector<8x128xbf16>
    %189 = arith.maximumf %187, %188 : vector<8x128xbf16>
    %190 = vector.broadcast %182 : bf16 to vector<8x128xbf16>
    %191 = arith.mulf %189, %190 : vector<8x128xbf16>
    %192 = arith.extf %191 : vector<8x128xbf16> to vector<8x128xf32>
    %193 = arith.addf %180, %192 : vector<8x128xf32>
    %c14 = arith.constant 14 : index
    %194 = memref.load %arg7[%c14] : memref<33xf32, #tpu.memory_space<smem>>
    %195 = arith.truncf %194 : f32 to bf16
    %196 = vector.extract_strided_slice %9 {offsets = [0, 14], sizes = [8, 1], strides = [1, 1]} : vector<8x32xbf16> to vector<8x1xbf16>
    %197 = vector.extract_strided_slice %10 {offsets = [14, 0], sizes = [1, 128], strides = [1, 1]} : vector<32x128xbf16> to vector<1x128xbf16>
    %198 = vector.broadcast %196 : vector<8x1xbf16> to vector<8x128xbf16>
    %199 = vector.broadcast %197 : vector<1x128xbf16> to vector<8x128xbf16>
    %200 = arith.addf %198, %199 : vector<8x128xbf16>
    %cst_22 = arith.constant 0.000000e+00 : bf16
    %201 = vector.broadcast %cst_22 : bf16 to vector<8x128xbf16>
    %202 = arith.maximumf %200, %201 : vector<8x128xbf16>
    %203 = vector.broadcast %195 : bf16 to vector<8x128xbf16>
    %204 = arith.mulf %202, %203 : vector<8x128xbf16>
    %205 = arith.extf %204 : vector<8x128xbf16> to vector<8x128xf32>
    %206 = arith.addf %193, %205 : vector<8x128xf32>
    %c15 = arith.constant 15 : index
    %207 = memref.load %arg7[%c15] : memref<33xf32, #tpu.memory_space<smem>>
    %208 = arith.truncf %207 : f32 to bf16
    %209 = vector.extract_strided_slice %9 {offsets = [0, 15], sizes = [8, 1], strides = [1, 1]} : vector<8x32xbf16> to vector<8x1xbf16>
    %210 = vector.extract_strided_slice %10 {offsets = [15, 0], sizes = [1, 128], strides = [1, 1]} : vector<32x128xbf16> to vector<1x128xbf16>
    %211 = vector.broadcast %209 : vector<8x1xbf16> to vector<8x128xbf16>
    %212 = vector.broadcast %210 : vector<1x128xbf16> to vector<8x128xbf16>
    %213 = arith.addf %211, %212 : vector<8x128xbf16>
    %cst_23 = arith.constant 0.000000e+00 : bf16
    %214 = vector.broadcast %cst_23 : bf16 to vector<8x128xbf16>
    %215 = arith.maximumf %213, %214 : vector<8x128xbf16>
    %216 = vector.broadcast %208 : bf16 to vector<8x128xbf16>
    %217 = arith.mulf %215, %216 : vector<8x128xbf16>
    %218 = arith.extf %217 : vector<8x128xbf16> to vector<8x128xf32>
    %219 = arith.addf %206, %218 : vector<8x128xf32>
    %c16 = arith.constant 16 : index
    %220 = memref.load %arg7[%c16] : memref<33xf32, #tpu.memory_space<smem>>
    %221 = arith.truncf %220 : f32 to bf16
    %222 = vector.extract_strided_slice %9 {offsets = [0, 16], sizes = [8, 1], strides = [1, 1]} : vector<8x32xbf16> to vector<8x1xbf16>
    %223 = vector.extract_strided_slice %10 {offsets = [16, 0], sizes = [1, 128], strides = [1, 1]} : vector<32x128xbf16> to vector<1x128xbf16>
    %224 = vector.broadcast %222 : vector<8x1xbf16> to vector<8x128xbf16>
    %225 = vector.broadcast %223 : vector<1x128xbf16> to vector<8x128xbf16>
    %226 = arith.addf %224, %225 : vector<8x128xbf16>
    %cst_24 = arith.constant 0.000000e+00 : bf16
    %227 = vector.broadcast %cst_24 : bf16 to vector<8x128xbf16>
    %228 = arith.maximumf %226, %227 : vector<8x128xbf16>
    %229 = vector.broadcast %221 : bf16 to vector<8x128xbf16>
    %230 = arith.mulf %228, %229 : vector<8x128xbf16>
    %231 = arith.extf %230 : vector<8x128xbf16> to vector<8x128xf32>
    %232 = arith.addf %219, %231 : vector<8x128xf32>
    %c17 = arith.constant 17 : index
    %233 = memref.load %arg7[%c17] : memref<33xf32, #tpu.memory_space<smem>>
    %234 = arith.truncf %233 : f32 to bf16
    %235 = vector.extract_strided_slice %9 {offsets = [0, 17], sizes = [8, 1], strides = [1, 1]} : vector<8x32xbf16> to vector<8x1xbf16>
    %236 = vector.extract_strided_slice %10 {offsets = [17, 0], sizes = [1, 128], strides = [1, 1]} : vector<32x128xbf16> to vector<1x128xbf16>
    %237 = vector.broadcast %235 : vector<8x1xbf16> to vector<8x128xbf16>
    %238 = vector.broadcast %236 : vector<1x128xbf16> to vector<8x128xbf16>
    %239 = arith.addf %237, %238 : vector<8x128xbf16>
    %cst_25 = arith.constant 0.000000e+00 : bf16
    %240 = vector.broadcast %cst_25 : bf16 to vector<8x128xbf16>
    %241 = arith.maximumf %239, %240 : vector<8x128xbf16>
    %242 = vector.broadcast %234 : bf16 to vector<8x128xbf16>
    %243 = arith.mulf %241, %242 : vector<8x128xbf16>
    %244 = arith.extf %243 : vector<8x128xbf16> to vector<8x128xf32>
    %245 = arith.addf %232, %244 : vector<8x128xf32>
    %c18 = arith.constant 18 : index
    %246 = memref.load %arg7[%c18] : memref<33xf32, #tpu.memory_space<smem>>
    %247 = arith.truncf %246 : f32 to bf16
    %248 = vector.extract_strided_slice %9 {offsets = [0, 18], sizes = [8, 1], strides = [1, 1]} : vector<8x32xbf16> to vector<8x1xbf16>
    %249 = vector.extract_strided_slice %10 {offsets = [18, 0], sizes = [1, 128], strides = [1, 1]} : vector<32x128xbf16> to vector<1x128xbf16>
    %250 = vector.broadcast %248 : vector<8x1xbf16> to vector<8x128xbf16>
    %251 = vector.broadcast %249 : vector<1x128xbf16> to vector<8x128xbf16>
    %252 = arith.addf %250, %251 : vector<8x128xbf16>
    %cst_26 = arith.constant 0.000000e+00 : bf16
    %253 = vector.broadcast %cst_26 : bf16 to vector<8x128xbf16>
    %254 = arith.maximumf %252, %253 : vector<8x128xbf16>
    %255 = vector.broadcast %247 : bf16 to vector<8x128xbf16>
    %256 = arith.mulf %254, %255 : vector<8x128xbf16>
    %257 = arith.extf %256 : vector<8x128xbf16> to vector<8x128xf32>
    %258 = arith.addf %245, %257 : vector<8x128xf32>
    %c19 = arith.constant 19 : index
    %259 = memref.load %arg7[%c19] : memref<33xf32, #tpu.memory_space<smem>>
    %260 = arith.truncf %259 : f32 to bf16
    %261 = vector.extract_strided_slice %9 {offsets = [0, 19], sizes = [8, 1], strides = [1, 1]} : vector<8x32xbf16> to vector<8x1xbf16>
    %262 = vector.extract_strided_slice %10 {offsets = [19, 0], sizes = [1, 128], strides = [1, 1]} : vector<32x128xbf16> to vector<1x128xbf16>
    %263 = vector.broadcast %261 : vector<8x1xbf16> to vector<8x128xbf16>
    %264 = vector.broadcast %262 : vector<1x128xbf16> to vector<8x128xbf16>
    %265 = arith.addf %263, %264 : vector<8x128xbf16>
    %cst_27 = arith.constant 0.000000e+00 : bf16
    %266 = vector.broadcast %cst_27 : bf16 to vector<8x128xbf16>
    %267 = arith.maximumf %265, %266 : vector<8x128xbf16>
    %268 = vector.broadcast %260 : bf16 to vector<8x128xbf16>
    %269 = arith.mulf %267, %268 : vector<8x128xbf16>
    %270 = arith.extf %269 : vector<8x128xbf16> to vector<8x128xf32>
    %271 = arith.addf %258, %270 : vector<8x128xf32>
    %c20 = arith.constant 20 : index
    %272 = memref.load %arg7[%c20] : memref<33xf32, #tpu.memory_space<smem>>
    %273 = arith.truncf %272 : f32 to bf16
    %274 = vector.extract_strided_slice %9 {offsets = [0, 20], sizes = [8, 1], strides = [1, 1]} : vector<8x32xbf16> to vector<8x1xbf16>
    %275 = vector.extract_strided_slice %10 {offsets = [20, 0], sizes = [1, 128], strides = [1, 1]} : vector<32x128xbf16> to vector<1x128xbf16>
    %276 = vector.broadcast %274 : vector<8x1xbf16> to vector<8x128xbf16>
    %277 = vector.broadcast %275 : vector<1x128xbf16> to vector<8x128xbf16>
    %278 = arith.addf %276, %277 : vector<8x128xbf16>
    %cst_28 = arith.constant 0.000000e+00 : bf16
    %279 = vector.broadcast %cst_28 : bf16 to vector<8x128xbf16>
    %280 = arith.maximumf %278, %279 : vector<8x128xbf16>
    %281 = vector.broadcast %273 : bf16 to vector<8x128xbf16>
    %282 = arith.mulf %280, %281 : vector<8x128xbf16>
    %283 = arith.extf %282 : vector<8x128xbf16> to vector<8x128xf32>
    %284 = arith.addf %271, %283 : vector<8x128xf32>
    %c21 = arith.constant 21 : index
    %285 = memref.load %arg7[%c21] : memref<33xf32, #tpu.memory_space<smem>>
    %286 = arith.truncf %285 : f32 to bf16
    %287 = vector.extract_strided_slice %9 {offsets = [0, 21], sizes = [8, 1], strides = [1, 1]} : vector<8x32xbf16> to vector<8x1xbf16>
    %288 = vector.extract_strided_slice %10 {offsets = [21, 0], sizes = [1, 128], strides = [1, 1]} : vector<32x128xbf16> to vector<1x128xbf16>
    %289 = vector.broadcast %287 : vector<8x1xbf16> to vector<8x128xbf16>
    %290 = vector.broadcast %288 : vector<1x128xbf16> to vector<8x128xbf16>
    %291 = arith.addf %289, %290 : vector<8x128xbf16>
    %cst_29 = arith.constant 0.000000e+00 : bf16
    %292 = vector.broadcast %cst_29 : bf16 to vector<8x128xbf16>
    %293 = arith.maximumf %291, %292 : vector<8x128xbf16>
    %294 = vector.broadcast %286 : bf16 to vector<8x128xbf16>
    %295 = arith.mulf %293, %294 : vector<8x128xbf16>
    %296 = arith.extf %295 : vector<8x128xbf16> to vector<8x128xf32>
    %297 = arith.addf %284, %296 : vector<8x128xf32>
    %c22 = arith.constant 22 : index
    %298 = memref.load %arg7[%c22] : memref<33xf32, #tpu.memory_space<smem>>
    %299 = arith.truncf %298 : f32 to bf16
    %300 = vector.extract_strided_slice %9 {offsets = [0, 22], sizes = [8, 1], strides = [1, 1]} : vector<8x32xbf16> to vector<8x1xbf16>
    %301 = vector.extract_strided_slice %10 {offsets = [22, 0], sizes = [1, 128], strides = [1, 1]} : vector<32x128xbf16> to vector<1x128xbf16>
    %302 = vector.broadcast %300 : vector<8x1xbf16> to vector<8x128xbf16>
    %303 = vector.broadcast %301 : vector<1x128xbf16> to vector<8x128xbf16>
    %304 = arith.addf %302, %303 : vector<8x128xbf16>
    %cst_30 = arith.constant 0.000000e+00 : bf16
    %305 = vector.broadcast %cst_30 : bf16 to vector<8x128xbf16>
    %306 = arith.maximumf %304, %305 : vector<8x128xbf16>
    %307 = vector.broadcast %299 : bf16 to vector<8x128xbf16>
    %308 = arith.mulf %306, %307 : vector<8x128xbf16>
    %309 = arith.extf %308 : vector<8x128xbf16> to vector<8x128xf32>
    %310 = arith.addf %297, %309 : vector<8x128xf32>
    %c23 = arith.constant 23 : index
    %311 = memref.load %arg7[%c23] : memref<33xf32, #tpu.memory_space<smem>>
    %312 = arith.truncf %311 : f32 to bf16
    %313 = vector.extract_strided_slice %9 {offsets = [0, 23], sizes = [8, 1], strides = [1, 1]} : vector<8x32xbf16> to vector<8x1xbf16>
    %314 = vector.extract_strided_slice %10 {offsets = [23, 0], sizes = [1, 128], strides = [1, 1]} : vector<32x128xbf16> to vector<1x128xbf16>
    %315 = vector.broadcast %313 : vector<8x1xbf16> to vector<8x128xbf16>
    %316 = vector.broadcast %314 : vector<1x128xbf16> to vector<8x128xbf16>
    %317 = arith.addf %315, %316 : vector<8x128xbf16>
    %cst_31 = arith.constant 0.000000e+00 : bf16
    %318 = vector.broadcast %cst_31 : bf16 to vector<8x128xbf16>
    %319 = arith.maximumf %317, %318 : vector<8x128xbf16>
    %320 = vector.broadcast %312 : bf16 to vector<8x128xbf16>
    %321 = arith.mulf %319, %320 : vector<8x128xbf16>
    %322 = arith.extf %321 : vector<8x128xbf16> to vector<8x128xf32>
    %323 = arith.addf %310, %322 : vector<8x128xf32>
    %c24 = arith.constant 24 : index
    %324 = memref.load %arg7[%c24] : memref<33xf32, #tpu.memory_space<smem>>
    %325 = arith.truncf %324 : f32 to bf16
    %326 = vector.extract_strided_slice %9 {offsets = [0, 24], sizes = [8, 1], strides = [1, 1]} : vector<8x32xbf16> to vector<8x1xbf16>
    %327 = vector.extract_strided_slice %10 {offsets = [24, 0], sizes = [1, 128], strides = [1, 1]} : vector<32x128xbf16> to vector<1x128xbf16>
    %328 = vector.broadcast %326 : vector<8x1xbf16> to vector<8x128xbf16>
    %329 = vector.broadcast %327 : vector<1x128xbf16> to vector<8x128xbf16>
    %330 = arith.addf %328, %329 : vector<8x128xbf16>
    %cst_32 = arith.constant 0.000000e+00 : bf16
    %331 = vector.broadcast %cst_32 : bf16 to vector<8x128xbf16>
    %332 = arith.maximumf %330, %331 : vector<8x128xbf16>
    %333 = vector.broadcast %325 : bf16 to vector<8x128xbf16>
    %334 = arith.mulf %332, %333 : vector<8x128xbf16>
    %335 = arith.extf %334 : vector<8x128xbf16> to vector<8x128xf32>
    %336 = arith.addf %323, %335 : vector<8x128xf32>
    %c25 = arith.constant 25 : index
    %337 = memref.load %arg7[%c25] : memref<33xf32, #tpu.memory_space<smem>>
    %338 = arith.truncf %337 : f32 to bf16
    %339 = vector.extract_strided_slice %9 {offsets = [0, 25], sizes = [8, 1], strides = [1, 1]} : vector<8x32xbf16> to vector<8x1xbf16>
    %340 = vector.extract_strided_slice %10 {offsets = [25, 0], sizes = [1, 128], strides = [1, 1]} : vector<32x128xbf16> to vector<1x128xbf16>
    %341 = vector.broadcast %339 : vector<8x1xbf16> to vector<8x128xbf16>
    %342 = vector.broadcast %340 : vector<1x128xbf16> to vector<8x128xbf16>
    %343 = arith.addf %341, %342 : vector<8x128xbf16>
    %cst_33 = arith.constant 0.000000e+00 : bf16
    %344 = vector.broadcast %cst_33 : bf16 to vector<8x128xbf16>
    %345 = arith.maximumf %343, %344 : vector<8x128xbf16>
    %346 = vector.broadcast %338 : bf16 to vector<8x128xbf16>
    %347 = arith.mulf %345, %346 : vector<8x128xbf16>
    %348 = arith.extf %347 : vector<8x128xbf16> to vector<8x128xf32>
    %349 = arith.addf %336, %348 : vector<8x128xf32>
    %c26 = arith.constant 26 : index
    %350 = memref.load %arg7[%c26] : memref<33xf32, #tpu.memory_space<smem>>
    %351 = arith.truncf %350 : f32 to bf16
    %352 = vector.extract_strided_slice %9 {offsets = [0, 26], sizes = [8, 1], strides = [1, 1]} : vector<8x32xbf16> to vector<8x1xbf16>
    %353 = vector.extract_strided_slice %10 {offsets = [26, 0], sizes = [1, 128], strides = [1, 1]} : vector<32x128xbf16> to vector<1x128xbf16>
    %354 = vector.broadcast %352 : vector<8x1xbf16> to vector<8x128xbf16>
    %355 = vector.broadcast %353 : vector<1x128xbf16> to vector<8x128xbf16>
    %356 = arith.addf %354, %355 : vector<8x128xbf16>
    %cst_34 = arith.constant 0.000000e+00 : bf16
    %357 = vector.broadcast %cst_34 : bf16 to vector<8x128xbf16>
    %358 = arith.maximumf %356, %357 : vector<8x128xbf16>
    %359 = vector.broadcast %351 : bf16 to vector<8x128xbf16>
    %360 = arith.mulf %358, %359 : vector<8x128xbf16>
    %361 = arith.extf %360 : vector<8x128xbf16> to vector<8x128xf32>
    %362 = arith.addf %349, %361 : vector<8x128xf32>
    %c27 = arith.constant 27 : index
    %363 = memref.load %arg7[%c27] : memref<33xf32, #tpu.memory_space<smem>>
    %364 = arith.truncf %363 : f32 to bf16
    %365 = vector.extract_strided_slice %9 {offsets = [0, 27], sizes = [8, 1], strides = [1, 1]} : vector<8x32xbf16> to vector<8x1xbf16>
    %366 = vector.extract_strided_slice %10 {offsets = [27, 0], sizes = [1, 128], strides = [1, 1]} : vector<32x128xbf16> to vector<1x128xbf16>
    %367 = vector.broadcast %365 : vector<8x1xbf16> to vector<8x128xbf16>
    %368 = vector.broadcast %366 : vector<1x128xbf16> to vector<8x128xbf16>
    %369 = arith.addf %367, %368 : vector<8x128xbf16>
    %cst_35 = arith.constant 0.000000e+00 : bf16
    %370 = vector.broadcast %cst_35 : bf16 to vector<8x128xbf16>
    %371 = arith.maximumf %369, %370 : vector<8x128xbf16>
    %372 = vector.broadcast %364 : bf16 to vector<8x128xbf16>
    %373 = arith.mulf %371, %372 : vector<8x128xbf16>
    %374 = arith.extf %373 : vector<8x128xbf16> to vector<8x128xf32>
    %375 = arith.addf %362, %374 : vector<8x128xf32>
    %c28 = arith.constant 28 : index
    %376 = memref.load %arg7[%c28] : memref<33xf32, #tpu.memory_space<smem>>
    %377 = arith.truncf %376 : f32 to bf16
    %378 = vector.extract_strided_slice %9 {offsets = [0, 28], sizes = [8, 1], strides = [1, 1]} : vector<8x32xbf16> to vector<8x1xbf16>
    %379 = vector.extract_strided_slice %10 {offsets = [28, 0], sizes = [1, 128], strides = [1, 1]} : vector<32x128xbf16> to vector<1x128xbf16>
    %380 = vector.broadcast %378 : vector<8x1xbf16> to vector<8x128xbf16>
    %381 = vector.broadcast %379 : vector<1x128xbf16> to vector<8x128xbf16>
    %382 = arith.addf %380, %381 : vector<8x128xbf16>
    %cst_36 = arith.constant 0.000000e+00 : bf16
    %383 = vector.broadcast %cst_36 : bf16 to vector<8x128xbf16>
    %384 = arith.maximumf %382, %383 : vector<8x128xbf16>
    %385 = vector.broadcast %377 : bf16 to vector<8x128xbf16>
    %386 = arith.mulf %384, %385 : vector<8x128xbf16>
    %387 = arith.extf %386 : vector<8x128xbf16> to vector<8x128xf32>
    %388 = arith.addf %375, %387 : vector<8x128xf32>
    %c29 = arith.constant 29 : index
    %389 = memref.load %arg7[%c29] : memref<33xf32, #tpu.memory_space<smem>>
    %390 = arith.truncf %389 : f32 to bf16
    %391 = vector.extract_strided_slice %9 {offsets = [0, 29], sizes = [8, 1], strides = [1, 1]} : vector<8x32xbf16> to vector<8x1xbf16>
    %392 = vector.extract_strided_slice %10 {offsets = [29, 0], sizes = [1, 128], strides = [1, 1]} : vector<32x128xbf16> to vector<1x128xbf16>
    %393 = vector.broadcast %391 : vector<8x1xbf16> to vector<8x128xbf16>
    %394 = vector.broadcast %392 : vector<1x128xbf16> to vector<8x128xbf16>
    %395 = arith.addf %393, %394 : vector<8x128xbf16>
    %cst_37 = arith.constant 0.000000e+00 : bf16
    %396 = vector.broadcast %cst_37 : bf16 to vector<8x128xbf16>
    %397 = arith.maximumf %395, %396 : vector<8x128xbf16>
    %398 = vector.broadcast %390 : bf16 to vector<8x128xbf16>
    %399 = arith.mulf %397, %398 : vector<8x128xbf16>
    %400 = arith.extf %399 : vector<8x128xbf16> to vector<8x128xf32>
    %401 = arith.addf %388, %400 : vector<8x128xf32>
    %c30 = arith.constant 30 : index
    %402 = memref.load %arg7[%c30] : memref<33xf32, #tpu.memory_space<smem>>
    %403 = arith.truncf %402 : f32 to bf16
    %404 = vector.extract_strided_slice %9 {offsets = [0, 30], sizes = [8, 1], strides = [1, 1]} : vector<8x32xbf16> to vector<8x1xbf16>
    %405 = vector.extract_strided_slice %10 {offsets = [30, 0], sizes = [1, 128], strides = [1, 1]} : vector<32x128xbf16> to vector<1x128xbf16>
    %406 = vector.broadcast %404 : vector<8x1xbf16> to vector<8x128xbf16>
    %407 = vector.broadcast %405 : vector<1x128xbf16> to vector<8x128xbf16>
    %408 = arith.addf %406, %407 : vector<8x128xbf16>
    %cst_38 = arith.constant 0.000000e+00 : bf16
    %409 = vector.broadcast %cst_38 : bf16 to vector<8x128xbf16>
    %410 = arith.maximumf %408, %409 : vector<8x128xbf16>
    %411 = vector.broadcast %403 : bf16 to vector<8x128xbf16>
    %412 = arith.mulf %410, %411 : vector<8x128xbf16>
    %413 = arith.extf %412 : vector<8x128xbf16> to vector<8x128xf32>
    %414 = arith.addf %401, %413 : vector<8x128xf32>
    %c31 = arith.constant 31 : index
    %415 = memref.load %arg7[%c31] : memref<33xf32, #tpu.memory_space<smem>>
    %416 = arith.truncf %415 : f32 to bf16
    %417 = vector.extract_strided_slice %9 {offsets = [0, 31], sizes = [8, 1], strides = [1, 1]} : vector<8x32xbf16> to vector<8x1xbf16>
    %418 = vector.extract_strided_slice %10 {offsets = [31, 0], sizes = [1, 128], strides = [1, 1]} : vector<32x128xbf16> to vector<1x128xbf16>
    %419 = vector.broadcast %417 : vector<8x1xbf16> to vector<8x128xbf16>
    %420 = vector.broadcast %418 : vector<1x128xbf16> to vector<8x128xbf16>
    %421 = arith.addf %419, %420 : vector<8x128xbf16>
    %cst_39 = arith.constant 0.000000e+00 : bf16
    %422 = vector.broadcast %cst_39 : bf16 to vector<8x128xbf16>
    %423 = arith.maximumf %421, %422 : vector<8x128xbf16>
    %424 = vector.broadcast %416 : bf16 to vector<8x128xbf16>
    %425 = arith.mulf %423, %424 : vector<8x128xbf16>
    %426 = arith.extf %425 : vector<8x128xbf16> to vector<8x128xf32>
    %427 = arith.addf %414, %426 : vector<8x128xf32>
    %c32 = arith.constant 32 : index
    %428 = memref.load %arg7[%c32] : memref<33xf32, #tpu.memory_space<smem>>
    %429 = vector.broadcast %428 : f32 to vector<8x128xf32>
    %430 = arith.addf %427, %429 : vector<8x128xf32>
    %c0_40 = arith.constant 0 : index
    %c0_41 = arith.constant 0 : index
    %c0_42 = arith.constant 0 : index
    %431 = vector.load %arg6[%c0_40, %c0_41, %c0_42] : memref<1x8x128xf32, #tpu.memory_space<vmem>>, vector<1x8x128xf32>
    %432 = vector.shape_cast %431 : vector<1x8x128xf32> to vector<8x128xf32>
    %433 = arith.index_cast %arg0 : i32 to index
    %434 = memref.load %arg3[%433] : memref<2xi32, #tpu.memory_space<smem>>
    %435 = tpu.iota {dimensions = array<i32: 0>} : vector<8x128xi32>
    %c8_i32 = arith.constant 8 : i32
    %436 = arith.muli %arg1, %c8_i32 : i32
    %437 = vector.broadcast %436 : i32 to vector<8x128xi32>
    %438 = arith.addi %435, %437 : vector<8x128xi32>
    %439 = tpu.iota {dimensions = array<i32: 1>} : vector<8x128xi32>
    %c128_i32 = arith.constant 128 : i32
    %440 = arith.muli %arg2, %c128_i32 : i32
    %441 = vector.broadcast %440 : i32 to vector<8x128xi32>
    %442 = arith.addi %439, %441 : vector<8x128xi32>
    %443 = vector.broadcast %434 : i32 to vector<8x128xi32>
    %444 = arith.cmpi slt, %438, %443 : vector<8x128xi32>
    %445 = vector.broadcast %434 : i32 to vector<8x128xi32>
    %446 = arith.cmpi slt, %442, %445 : vector<8x128xi32>
    %447 = arith.andi %444, %446 : vector<8x128xi1>
    %cst_43 = arith.constant 0.000000e+00 : f32
    %448 = vector.broadcast %cst_43 : f32 to vector<8x128xf32>
    %449 = arith.maximumf %430, %448 : vector<8x128xf32>
    %450 = arith.mulf %430, %432 : vector<8x128xf32>
    %451 = arith.subf %449, %450 : vector<8x128xf32>
    %452 = math.absf %430 : vector<8x128xf32>
    %cst_44 = arith.constant 0.000000e+00 : f32
    %453 = vector.broadcast %cst_44 : f32 to vector<8x128xf32>
    %454 = arith.subf %453, %452 : vector<8x128xf32>
    %455 = math.exp %454 : vector<8x128xf32>
    %456 = math.log1p %455 : vector<8x128xf32>
    %457 = arith.addf %451, %456 : vector<8x128xf32>
    %cst_45 = arith.constant 0.000000e+00 : f32
    %458 = vector.broadcast %cst_45 : f32 to vector<8x128xf32>
    %459 = arith.select %447, %457, %458 : vector<8x128xi1>, vector<8x128xf32>
    %c0_46 = arith.constant 0 : index
    %c0_47 = arith.constant 0 : index
    %c0_48 = arith.constant 0 : index
    %460 = vector.load %arg8[%c0_46, %c0_47, %c0_48] : memref<1x1x128xf32, #tpu.memory_space<vmem>>, vector<1x1x128xf32>
    %cst_49 = arith.constant dense<0.000000e+00> : vector<128xf32>
    %461 = vector.multi_reduction <add>, %459, %cst_49 [0] : vector<8x128xf32> to vector<128xf32>
    %462 = vector.shape_cast %461 : vector<128xf32> to vector<1x128xf32>
    %463 = vector.shape_cast %462 : vector<1x128xf32> to vector<1x1x128xf32>
    %464 = arith.addf %460, %463 : vector<1x1x128xf32>
    %c0_50 = arith.constant 0 : index
    %c0_51 = arith.constant 0 : index
    %c0_52 = arith.constant 0 : index
    %465 = vector.load %arg8[%c0_50, %c0_51, %c0_52] : memref<1x1x128xf32, #tpu.memory_space<vmem>>, vector<1x1x128xf32>
    tpu.vector_store %arg8[%c0_50, %c0_51, %c0_52], %464 {strides = array<i32>} : memref<1x1x128xf32, #tpu.memory_space<vmem>>, vector<1x1x128xf32>,
    return
  }
  func.func @transform_0(%arg0: i32, %arg1: i32, %arg2: i32) -> i32 {
    %c0_i32 = arith.constant 0 : i32
    %c0_i32_0 = arith.constant 0 : i32
    return %c0_i32 : i32
  }
  func.func @transform_1(%arg0: i32, %arg1: i32, %arg2: i32) -> (i32, i32, i32) {
    %c0_i32 = arith.constant 0 : i32
    %c0_i32_0 = arith.constant 0 : i32
    return %arg0, %arg1, %c0_i32 : i32, i32, i32
  }
  func.func @transform_2(%arg0: i32, %arg1: i32, %arg2: i32) -> (i32, i32, i32) {
    %c0_i32 = arith.constant 0 : i32
    %c0_i32_0 = arith.constant 0 : i32
    return %arg0, %c0_i32, %arg2 : i32, i32, i32
  }
  func.func @transform_3(%arg0: i32, %arg1: i32, %arg2: i32) -> (i32, i32, i32) {
    %c0_i32 = arith.constant 0 : i32
    return %arg0, %arg1, %arg2 : i32, i32, i32
  }
  func.func @transform_4(%arg0: i32, %arg1: i32, %arg2: i32) -> i32 {
    %c0_i32 = arith.constant 0 : i32
    %c0_i32_0 = arith.constant 0 : i32
    return %c0_i32 : i32
  }
  func.func @transform_5(%arg0: i32, %arg1: i32, %arg2: i32) -> (i32, i32, i32) {
    %c0_i32 = arith.constant 0 : i32
    %c0_i32_0 = arith.constant 0 : i32
    %c0_i32_1 = arith.constant 0 : i32
    return %arg0, %c0_i32, %c0_i32_0 : i32, i32, i32
  }
}

</mosaic_0001>

<bundles_post_ra>
// kernel: fwd.3
= control target key start
LH: loop header
LB: loop body
LE: loop exit
PB: predicated region body
PF: predicated region fallthrough
CT: control target
= control target key end

     0   :  { %s603_s18 = smov 0   ;;  %s681_s0 = inlined_call_operand.vmem [shape: f32[16,32], index: 0, kind: input, shape index: {}]   ;;  %s682_s1 = inlined_call_operand.vmem [shape: bf16[32,192], index: 1, kind: input, shape index: {}]   ;;  %s683_s2 = inlined_call_operand.vmem [shape: f32[1,192], index: 2, kind: input, shape index: {}]   ;;  %s684_s3 = inlined_call_operand.vmem [shape: bf16[192,128], index: 3, kind: input, shape index: {}]   ;;  %s685_s4 = inlined_call_operand.vmem [shape: f32[1,128], index: 4, kind: input, shape index: {}]   ;;  %s686_s5 = inlined_call_operand.vmem [shape: f32[16,128], index: 5, kind: output, shape index: {}]  }
   0x1 LB: > { %s509_s19 = sadd.s32 4294967295, %s570_s18   ;;  %p513_p0 = scmp.ge.s32.totalorder %s570_s18, 1  ;;  %s570_s18 = sphi %s603_s18, %s15_s18  }
   0x2   : > { %p186_p1 = scmp.lt.s32.totalorder %s570_s18, 3 }
   0x4   : > { %p187_p2 = pnand %p513_p0, %p186_p1 }
   0x5   : > { %v546_v0 = vld [vmem:[%s682_s1 + $0x4] ss:$8 sps:$4 sm:$0xff] (!%p187_p2)   ;;  %p212_p3 = scmp.lt.s32.totalorder (!%p187_p2), %s509_s19, 1  ;;  %v548_v1 = vld [vmem:[%s682_s1] ss:$8 sps:$4 sm:$0xff] (!%p187_p2)   ;;  %v572_v2 = vmov (!%p187_p2), 0   ;;  %v229_v19 = vlaneseq (!%p187_p2) }
   0x6   : > { %190 = sbr.rel (%p187_p2) target bundleno = 454 (0x1c6), region = 40  ;;  %295 = vmatprep.mubr.bf16.mxu0 (!%p187_p2), %v572_v2  ;;  %415 = vmatprep.subr.bf16.mxu1 (!%p187_p2), %v572_v2  ;;  %v549_v3 = vld [vmem:[%s682_s1 + $0x14] ss:$8 sps:$4 sm:$0xff] (!%p187_p2)   ;;  %v551_v4 = vld [vmem:[%s682_s1 + $0x10] ss:$8 sps:$4 sm:$0xff] (!%p187_p2)   ;;  %v552_v5 = vld [vmem:[%s684_s3] sm:$0xff] (!%p187_p2)  }
   0x7   : > { %263 = vmatprep.subr.bf16.mxu0 (!%p187_p2), %v546_v0  ;;  %416 = vmatpush1.bf16.msra.mxu1 (!%p187_p2), %v552_v5  ;;  %v553_v6 = vld [vmem:[%s684_s3 + $0x8] sm:$0xff] (!%p187_p2)   ;;  %vm259_vm0 = vcmask (!%p187_p2), 261120   ;;  %v554_v9 = vld [vmem:[%s684_s3 + $0x10] sm:$0xff] (!%p187_p2)   ;;  %v555_v10 = vld [vmem:[%s684_s3 + $0x18] sm:$0xff] (!%p187_p2)   ;;  %v230_v20 = vshrl.u32 (!%p187_p2), %v229_v19, 7  ;;  %vm411_vm1 = vcmask (!%p187_p2), 523264  }
   0x8   : > { %264 = vmatpush1.bf16.msra.mxu0 (!%p187_p2), %v548_v1  ;;  %417 = vmatprep.subr.bf16.mxu1 (!%p187_p2), %v572_v2  ;;  %v556_v11 = vld [vmem:[%s684_s3 + $0x20] sm:$0xff] (!%p187_p2)   ;;  %v557_v12 = vld [vmem:[%s684_s3 + $0x28] sm:$0xff] (!%p187_p2)   ;;  %v558_v13 = vld [vmem:[%s684_s3 + $0x30] sm:$0xff] (!%p187_p2)  }
   0x9   : > { %265 = vmatprep.subr.bf16.mxu0 (!%p187_p2), %v549_v3  ;;  %v559_v14 = vld [vmem:[%s684_s3 + $0x38] sm:$0xff] (!%p187_p2)   ;;  %v560_v15 = vld [vmem:[%s684_s3 + $0x40] sm:$0xff] (!%p187_p2)   ;;  %v561_v16 = vld [vmem:[%s684_s3 + $0x48] sm:$0xff] (!%p187_p2)   ;;  %v231_v21 = vsub.s32 (!%p187_p2), 0, %v230_v20  ;;  %v235_v23 = vsub.s32 (!%p187_p2), 1, %v230_v20 }
   0xa   : > { %v562_v17 = vld [vmem:[%s684_s3 + $0x50] sm:$0xff] (!%p187_p2)   ;;  %v563_v18 = vld [vmem:[%s684_s3 + $0x58] sm:$0xff] (!%p187_p2)   ;;  %v227_v22 = vld [vmem:[%s683_s2] sm:$0x3] (!%p187_p2) }
   0xb   : > { %418 = vmatpush1.bf16.msra.mxu1 (!%p187_p2), %v553_v6  ;;  %v232_v24 = vrot.slane (!%p187_p2), %v227_v22, %v231_v21  ;;  %v236_v25 = vrot.slane (!%p187_p2), %v227_v22, %v235_v23  ;;  %v521_v36 = vld [vmem:[%s685_s4] ss:$0 sm:$0xff] (!%p187_p2) }
   0xc   : > { %266 = vmatpush1.bf16.msra.mxu0 (!%p187_p2), %v551_v4  ;;  %419 = vmatprep.subr.bf16.mxu1 (!%p187_p2), %v572_v2 }
   0xd   : > { %s688_s19 = smov (!%p212_p3, %s509_s19), 1 }
   0xe   : > { %s514_s30 = sshll.u32 %s688_s19, 3 }
   0xf   : > { %s215_s10 = scalar_lea.vmem %s681_s0, %s514_s30  ;;  %420 = vmatpush1.bf16.msra.mxu1 %v554_v9  ;;  %s219_s15 = scalar_lea.vmem %s686_s5, %s514_s30 }
  0x10   : > { %v221_v7 = vld [vmem:[%s215_s10] sm:$0xff]  ;;  %421 = vmatprep.subr.bf16.mxu1 %v572_v2 }
  0x11   : > { %v222_v8 = vpack.c.bf16 %v221_v7, %v221_v7 }
  0x13   : > { %520 = vmatmul.mubr.msk.bf16.vlgmr.msra.gmra.mrb[0].mxu0 %vm259_vm0, %v222_v8  ;;  %422 = vmatpush1.bf16.msra.mxu1 %v555_v10 }
  0x14   : > { %423 = vmatprep.subr.bf16.mxu1 %v572_v2 }
  0x17   : > { %424 = vmatpush1.bf16.msra.mxu1 %v556_v11 }
  0x18   : > { %425 = vmatprep.subr.bf16.mxu1 %v572_v2 }
  0x1b   : > { %426 = vmatpush1.bf16.msra.mxu1 %v557_v12 }
  0x1c   : > { %427 = vmatprep.subr.bf16.mxu1 %v572_v2 }
  0x1f   : > { %428 = vmatpush1.bf16.msra.mxu1 %v558_v13 }
  0x20   : > { %429 = vmatprep.subr.bf16.mxu1 %v572_v2 }
  0x23   : > { %430 = vmatpush1.bf16.msra.mxu1 %v559_v14 }
  0x24   : > { %431 = vmatprep.subr.bf16.mxu1 %v572_v2 }
  0x27   : > { %432 = vmatpush1.bf16.msra.mxu1 %v560_v15 }
  0x28   : > { %433 = vmatprep.subr.bf16.mxu1 %v572_v2 }
  0x2b   : > { %434 = vmatpush1.bf16.msra.mxu1 %v561_v16 }
  0x2c   : > { %435 = vmatprep.subr.bf16.mxu1 %v572_v2 }
  0x2f   : > { %436 = vmatpush1.bf16.msra.mxu1 %v562_v17 }
  0x30   : > { %437 = vmatprep.subr.bf16.mxu1 %v572_v2 }
  0x33   : > { %438 = vmatpush1.bf16.msra.mxu1 %v563_v18 }
  0xe6   : > { %v297_v26 = vpop.f32.mrb[0].mxu0 }
  0xe7   : > { %v298_v27 = vadd.f32 %v297_v26, %v232_v24  ;;  %v299_v28 = vpop.f32.mrb[1].mxu0 }
  0xe8   : > { %v300_v29 = vadd.f32 %v299_v28, %v236_v25  ;;  %v301_v30 = vpop.f32.mrb[2].mxu0 }
  0xe9   : > { %v304_v31 = vmax.f32 %v298_v27, 0.0  ;;  %v302_v32 = vpop.f32.mrb[3].mxu0 }
  0xea   : > { %v305_v33 = vmax.f32 %v300_v29, 0.0 }
  0xeb   : > { %v306_v35 = vpack.c.bf16 %v304_v31, %v304_v31 }
  0xec   : > { %v307_v34 = vpack.c.bf16 %v305_v33, %v305_v33 }
  0xee   : > { %534 = vmatprep.mubr.msk.bf16.mxu1 %vm411_vm1, %v307_v34 }
  0xef   : > { %448 = vmatmul.mubr.bf16.vlgmr.msra.gmra.mrb[0].mxu1 %v306_v35 }
 0x1c2   : > { %v449_v37 = vpop.f32.mrb[0].mxu1 }
 0x1c3   : > { %v450_v38 = vadd.f32 %v521_v36, %v449_v37  ;;  %v451_v39 = vpop.f32.mrb[1].mxu1 }
 0x1c4   : > { %v452_v40 = vpop.f32.mrb[2].mxu1 }
 0x1c5   : > { %455 = vst [vmem:[%s219_s15] sm:$0xff] %v450_v38  ;;  %v453_v41 = vpop.f32.mrb[3].mxu1 }
 0x1c6 PF: > { %s15_s18 = sadd.s32 1, %s570_s18  }
 0x1c7   : > { %p12_p4 = scmp.ge.s32.totalorder %s15_s18, 4  }
 0x1c9   :  { %14 = sbr.rel (!%p12_p4) target bundleno = 1 (0x1), region = 70 }

// kernel: fwd.4
= control target key start
LH: loop header
LB: loop body
LE: loop exit
PB: predicated region body
PF: predicated region fallthrough
CT: control target
= control target key end

     0   :  { %s619_s18 = smov 0   ;;  %s676_s0 = inlined_call_operand.vmem [shape: f32[32,64], index: 0, kind: input, shape index: {}]   ;;  %s677_s1 = inlined_call_operand.vmem [shape: bf16[64,96], index: 1, kind: input, shape index: {}]   ;;  %s678_s2 = inlined_call_operand.vmem [shape: f32[1,96], index: 2, kind: input, shape index: {}]   ;;  %s679_s3 = inlined_call_operand.vmem [shape: bf16[96,128], index: 3, kind: input, shape index: {}]   ;;  %s680_s4 = inlined_call_operand.vmem [shape: f32[1,128], index: 4, kind: input, shape index: {}]   ;;  %s681_s5 = inlined_call_operand.vmem [shape: bf16[32,128], index: 5, kind: output, shape index: {}]  }
   0x1 LB: > { %s485_s19 = sadd.s32 4294967295, %s585_s18   ;;  %p489_p0 = scmp.ge.s32.totalorder %s585_s18, 1  ;;  %s585_s18 = sphi %s619_s18, %s15_s18  }
   0x2   : > { %p188_p1 = scmp.lt.s32.totalorder %s585_s18, 3 }
   0x4   : > { %p189_p2 = pnand %p489_p0, %p188_p1 }
   0x5   : > { %v569_v0 = vld [vmem:[%s677_s1] sm:$0xff] (!%p189_p2)   ;;  %v587_v1 = vmov (!%p189_p2), 0.0   ;;  %v570_v2 = vld [vmem:[%s677_s1 + $0x8] sm:$0xff] (!%p189_p2)   ;;  %vm588_vm0 = vmmov (!%p189_p2), 0   ;;  %s490_s24 = sshll.u32 (!%p189_p2), %s485_s19, 1  ;;  %v571_v4 = vld [vmem:[%s677_s1 + $0x10] sm:$0xff] (!%p189_p2)  }
   0x6   : > { %192 = sbr.rel (%p189_p2) target bundleno = 461 (0x1cd), region = 40  ;;  %531 = vmatprep.subr.bf16.mxu0 (!%p189_p2), %v587_v1  ;;  %543 = vmatprep.subr.bf16.mxu1 (!%p189_p2), %v587_v1  ;;  %p217_p3 = scmp.lt.s32.totalorder (!%p189_p2), %s490_s24, 3  ;;  %v573_v3 = vld [vmem:[%s679_s3] sm:$0xff] (!%p189_p2)   ;;  %v574_v5 = vld [vmem:[%s679_s3 + $0x8] sm:$0xff] (!%p189_p2)   ;;  %v572_v6 = vld [vmem:[%s677_s1 + $0x18] sm:$0xff] (!%p189_p2)   ;;  %vm271_vm1 = vcmask (!%p189_p2), 523264  }
   0x7   : > { %532 = vmatpush3.bf16.msra.mxu0 (!%p189_p2), %v569_v0  ;;  %539 = vmatprep.mubr.msk.bf16.mxu0 (!%p189_p2), %vm588_vm0, %v587_v1  ;;  %v575_v7 = vld [vmem:[%s679_s3 + $0x10] sm:$0xff] (!%p189_p2)   ;;  %v576_v11 = vld [vmem:[%s679_s3 + $0x18] sm:$0xff] (!%p189_p2)   ;;  %v577_v12 = vld [vmem:[%s679_s3 + $0x20] sm:$0xff] (!%p189_p2)   ;;  %vm374_vm2 = vcmask (!%p189_p2), 785408  }
   0x8   : > { %533 = vmatprep.subr.bf16.mxu0 (!%p189_p2), %v587_v1  ;;  %555 = vmatprep.mubr.msk.bf16.mxu1 (!%p189_p2), %vm588_vm0, %v587_v1  ;;  %v578_v13 = vld [vmem:[%s679_s3 + $0x28] sm:$0xff] (!%p189_p2)   ;;  %v494_v14 = vld [vmem:[%s678_s2] ss:$0 sm:$0xff] (!%p189_p2) }
   0x9   : > { %544 = vmatpush3.bf16.msra.mxu1 (!%p189_p2), %v573_v3  ;;  %v500_v24 = vld [vmem:[%s680_s4] ss:$0 sm:$0xff] (!%p189_p2) }
   0xa   : > { %545 = vmatprep.subr.bf16.mxu1 (!%p189_p2), %v587_v1 }
   0xb   : > { %534 = vmatpush3.bf16.msra.mxu0 (!%p189_p2), %v570_v2 }
   0xc   : > { %535 = vmatprep.subr.bf16.mxu0 (!%p189_p2), %v587_v1 }
   0xd   : > { %s683_s24 = smov (!%p217_p3, %s490_s24), 3  ;;  %546 = vmatpush3.bf16.msra.mxu1 %v574_v5 }
   0xe   : > { %s491_s6 = sshll.u32 %s683_s24, 3  ;;  %547 = vmatprep.subr.bf16.mxu1 %v587_v1  ;;  %s493_s26 = sshll.u32 %s683_s24, 2 }
   0xf   : > { %s220_s9 = scalar_lea.vmem %s676_s0, %s491_s6  ;;  %536 = vmatpush3.bf16.msra.mxu0 %v571_v4  ;;  %s226_s29 = scalar_lea.vmem %s681_s5, %s493_s26 }
  0x10   : > { %v229_v8 = vld [vmem:[%s220_s9] sm:$0xff]  ;;  %v230_v9 = vld [vmem:[%s220_s9 + $0x8] sm:$0xff]  ;;  %537 = vmatprep.subr.bf16.mxu0 %v587_v1 }
  0x11   : > { %v231_v10 = vpack.c.bf16 %v230_v9, %v229_v8  ;;  %548 = vmatpush3.bf16.msra.mxu1 %v575_v7 }
  0x12   : > { %549 = vmatprep.subr.bf16.mxu1 %v587_v1 }
  0x13   : > { %538 = vmatpush3.bf16.msra.mxu0 %v572_v6 }
  0x15   : > { %550 = vmatpush3.bf16.msra.mxu1 %v576_v11 }
  0x16   : > { %540 = vmatmul.mubr.msk.bf16.vlgmr.msra.gmra.mrb[0].mxu0 %vm271_vm1, %v231_v10  ;;  %551 = vmatprep.subr.bf16.mxu1 %v587_v1 }
  0x19   : > { %552 = vmatpush3.bf16.msra.mxu1 %v577_v12 }
  0x1a   : > { %553 = vmatprep.subr.bf16.mxu1 %v587_v1 }
  0x1d   : > { %554 = vmatpush3.bf16.msra.mxu1 %v578_v13 }
  0xe9   : > { %v309_v15 = vpop.f32.mrb[0].mxu0 }
  0xea   : > { %v310_v16 = vadd.f32 %v494_v14, %v309_v15  ;;  %v541_v17 = vpop.f32.mrb[1].mxu0 }
  0xeb   : > { %v312_v18 = vpop.f32.mrb[2].mxu0 }
  0xec   : > { %v313_v19 = vadd.f32 %v494_v14, %v312_v18  ;;  %v542_v20 = vpop.f32.mrb[3].mxu0  ;;  %v316_v21 = vmax.f32 %v310_v16, 0.0 }
  0xee   : > { %v317_v22 = vmax.f32 %v313_v19, 0.0 }
  0xf0   : > { %v318_v23 = vpack.c.bf16 %v317_v22, %v316_v21 }
  0xf2   : > { %556 = vmatmul.mubr.msk.bf16.vlgmr.msra.gmra.mrb[0].mxu1 %vm374_vm2, %v318_v23 }
 0x1c5   : > { %v412_v25 = vpop.f32.mrb[0].mxu1 }
 0x1c6   : > { %v557_v26 = vpop.f32.mrb[1].mxu1  ;;  %v413_v28 = vadd.f32 %v500_v24, %v412_v25 }
 0x1c7   : > { %v415_v27 = vpop.f32.mrb[2].mxu1 }
 0x1c8   : > { %v416_v29 = vadd.f32 %v500_v24, %v415_v27  ;;  %v558_v30 = vpop.f32.mrb[3].mxu1 }
 0x1ca   : > { %v517_v31 = vpack.c.bf16 %v416_v29, %v413_v28 }
 0x1cc   : > { %518 = vst [vmem:[%s226_s29] sm:$0xff] %v517_v31  }
 0x1cd PF: > { %s15_s18 = sadd.s32 1, %s585_s18  }
 0x1ce   : > { %p12_p4 = scmp.ge.s32.totalorder %s15_s18, 4  }
 0x1d0   :  { %14 = sbr.rel (!%p12_p4) target bundleno = 1 (0x1), region = 70 }

// kernel: fwd.5
= control target key start
LH: loop header
LB: loop body
LE: loop exit
PB: predicated region body
PF: predicated region fallthrough
CT: control target
= control target key end

     0   :  { %s2488_s0 = inlined_call_operand.vmem [shape: s32[2], index: 0, kind: input, shape index: {}]   ;;  %s2489_s1 = inlined_call_operand.vmem [shape: f32[2,8,32], index: 1, kind: input, shape index: {}]   ;;  %s2490_s2 = inlined_call_operand.vmem [shape: f32[2,32,128], index: 2, kind: input, shape index: {}]   ;;  %s2491_s3 = inlined_call_operand.vmem [shape: f32[2,8,128], index: 3, kind: input, shape index: {}]   ;;  %s2492_s4 = inlined_call_operand.vmem [shape: f32[33], index: 4, kind: input, shape index: {}]   ;;  %s2493_s5 = inlined_call_operand.vmem [shape: f32[2,1,128], index: 5, kind: output, shape index: {}]  }
   0x1   :  { %2503 = sst [smem:[#allocation15_spill]] %s2488_s0 }
   0x2   :  { %2504 = sst [smem:[#allocation16_spill]] %s2489_s1 }
   0x3   :  { %2505 = sst [smem:[#allocation17_spill]] %s2490_s2 }
   0x4   :  { %2506 = sst [smem:[#allocation18_spill]] %s2491_s3 }
   0x5   :  { %2507 = sst [smem:[#allocation19_spill]] %s2492_s4 }
   0x6   :  { %2508 = sst [smem:[#allocation20_spill]] %s2493_s5 }
   0x7   :  { %10 = vsyncpa [#allocation3], 0 }
   0x8   :  { %11 = vsyncpa [#allocation5], 0  ;;  %s1726_s18 = smov 0   ;;  %s1728_s19 = smov 0  }
   0x9   :  { %s1730_s20 = smov 0  }
   0xa LB: > { %2509 = sst [smem:[#allocation8_spill]] %s1651_s18  ;;  %s1436_s21 = sadd.s32 4294967295, %s1659_s20   ;;  %s1659_s20 = sphi %s1730_s20, %s17_s20   ;;  %s1655_s19 = sphi %s1728_s19, %s2534_s19   ;;  %s1651_s18 = sphi %s1726_s18, %s2533_s18  }
   0xb   : > { %2510 = sst [smem:[#allocation9_spill]] %s1655_s19  ;;  %s36_s22 = sadd.s32 1, %s1655_s19 }
   0xc   : > { %2511 = sst [smem:[#allocation10_spill]] %s1659_s20  ;;  %p38_p0 = scmp.ge.s32.totalorder %s36_s22, 2 }
   0xd   : > { %p1438_p1 = scmp.ge.s32.totalorder %s1659_s20, 1  ;;  %p195_p2 = scmp.lt.s32.totalorder %s1659_s20, 3 }
   0xe   : > { %s2536_s22 = smov (%p38_p0, %s36_s22), 0  ;;  %p1751_p4 = scmp.eq.s32.totalorder %s1436_s21, 0 }
   0xf   : > { %2512 = sst [smem:[#allocation11_spill]] %s2536_s22  ;;  %p1747_p3 = pnand %p1438_p1, %p195_p2 }
  0x10   : > { %s2514_s24 = scalar_select %p1751_p4, 1, 0 }
  0x11   : > { %s2513_s23 = scalar_select %p1747_p3, 1, 0 }
  0x12   : > { %s2515_s0 = sld [smem:[#allocation15_spill]]  ;;  %p1492_p5 = pneg %p1747_p3 }
  0x13   : > { %s2516_s4 = sld [smem:[#allocation19_spill]] }
  0x14   : > { %p1765_p6 = pnand %p1751_p4, %p1492_p5 }
  0x16   : > { %p1601_p8 = pneg %p1765_p6 }
  0x18   : > { %s208_s27 = sshll.u32 %s2515_s0, 4  ;;  %s209_s27 = int_to_ptr.vmem [resolvable:$true] %s208_s27 }
  0x19   : > { %s219_s30 = sshll.u32 %s2516_s4, 4  ;;  %s1599_s7 = scalar_lea.vmem %s209_s27, 16  ;;  %s220_s30 = int_to_ptr.vmem [resolvable:$true] %s219_s30 }
  0x1a   : > { %p1600_p7 = scmp.ne.s32.totalorder %s209_s27, %s1599_s7  ;;  %p1607_p11 = scmp.lt.s32.totalorder %s209_s27, %s209_s27 }
  0x1b   : > { %p1608_p12 = scmp.lt.s32.totalorder %s1599_s7, %s1599_s7 }
  0x1c   : > { %p1602_p9 = pnand %p1601_p8, %p1600_p7 }
  0x1d   : > { %p1609_p13 = por %p1608_p12, %p1607_p11 }
  0x1e   : > { %p1603_p10 = pneg %p1602_p9 }
  0x20   : > { %p1610_p0 = pnand %p1609_p13, %p1603_p10 }
  0x22   : > { %1613 = shalt.err (!%p1610_p0)
}
  0x23   : > { %s1661_s8 = smov [#allocation2]   ;;  %s1614_s9 = scalar_lea.vmem %s220_s30, 16 }
  0x24   : > { %1495 = dma.vmem_to_smem (!%p1765_p6), %s209_s27, 16, %s1661_s8, [#allocation3]  }
  0x25   : > { %p1615_p1 = scmp.ne.s32.totalorder %s220_s30, %s1614_s9  ;;  %p1622_p4 = scmp.lt.s32.totalorder %s220_s30, %s220_s30 }
  0x26   : > { %p1623_p3 = scmp.lt.s32.totalorder %s1614_s9, %s1614_s9 }
  0x27   : > { %p1617_p2 = pnand %p1615_p1, %p1601_p8 }
  0x28   : > { %p1624_p7 = por %p1623_p3, %p1622_p4 }
  0x29   : > { %p1618_p5 = pneg %p1617_p2 }
  0x2b   : > { %p1625_p9 = pnand %p1624_p7, %p1618_p5 }
  0x2d   : > { %1628 = shalt.err (!%p1625_p9)
}
  0x2e   : > { %s1662_s10 = smov [#allocation4]   ;;  %p2518_p10 = scmp.ne.s32.totalorder %s2513_s23, 0 }
  0x2f   : > { %1498 = dma.vmem_to_smem (!%p1765_p6), %s220_s30, 16, %s1662_s10, [#allocation5]  }
  0x30   : > { %266 = sbr.rel (%p2518_p10) target bundleno = 364 (0x16c), region = 40 }
  0x37   : > { %p2519_p11 = scmp.ne.s32.totalorder %s2514_s24, 0 }
  0x39   : > { %1642 = dma.done.wait (%p2519_p11), [#allocation3], 16  }
  0x3a   : > { %1644 = vsyncadd (%p2519_p11), [#allocation3], 4294967280 }
  0x3b   : > { %1646 = dma.done.wait (%p2519_p11), [#allocation5], 16  }
  0x3c   : > { %1648 = vsyncadd (%p2519_p11), [#allocation5], 4294967280 }
  0x3d   : > { %276 = sfence }
  0x3e   : > { %p317_p3 = scmp.lt.s32.totalorder %s1651_s18, 1  ;;  %v1663_v0 = vmov 2   ;;  %v1664_v1 = vmov 0   ;;  %s1787_s11 = sld [smem:[#allocation4 + $0x2]]  ;;  %v1665_v4 = vmov 3   ;;  %v1666_v5 = vmov 1  }
  0x3f   : > { %1564 = vset.pattern.permute.xlu1 %v1663_v0  ;;  %1562 = vset.pattern.permute.xlu0 %v1664_v1  ;;  %s2521_s1 = sld [smem:[#allocation16_spill]]  ;;  %s1803_s21 = sld [smem:[#allocation4]]  ;;  %v1667_v6 = vmov 4   ;;  %v1668_v7 = vmov 5   ;;  %v1669_v8 = vmov 6   ;;  %v1670_v9 = vmov 8  }
  0x40   : > { %s1790_s12 = scalar_select %p317_p3, %s1651_s18, 1  ;;  %v1671_v10 = vmov 7   ;;  %v1672_v11 = vmov 11   ;;  %v1673_v12 = vmov 9   ;;  %v1674_v13 = vmov 14  }
  0x41   : > { %s1808_s26 = sld [smem:[#allocation4 + $0x3]]  ;;  %s1815_s30 = sld [smem:[#allocation4 + $0x1]]  ;;  %v1675_v14 = vmov 10   ;;  %v1676_v15 = vmov 17   ;;  %v1677_v16 = vmov 12   ;;  %v1678_v17 = vmov 20  }
  0x42   : > { %2520 = sst [smem:[#allocation12_spill]] %s1790_s12  ;;  %s2497_s13 = sshll.u32 %s1790_s12, 3  ;;  %v1679_v18 = vmov 13   ;;  %v1680_v19 = vmov 23   ;;  %v1681_v20 = vmov 15   ;;  %v1682_v21 = vmov 26  }
  0x43   : > { %s1823_s9 = sld [smem:[#allocation4 + $0x4]]  ;;  %v1683_v22 = vmov 16   ;;  %v1684_v23 = vmov 29   ;;  %v1685_v24 = vmov 18   ;;  %v1686_v25 = vmov 31  }
  0x44   : > { %s427_s17 = sshrl.u32 %s1787_s11, 16  ;;  %p426_p4 = scmp.ne.f32.partialorder %s1787_s11, %s1787_s11  ;;  %v1687_v26 = vmov 19   ;;  %v1688_v27 = vmov 21   ;;  %v1689_v28 = vmov 22   ;;  %v1690_v29 = vmov 24  }
  0x45   : > { %s323_s16 = scalar_lea.vmem %s2521_s1, %s2497_s13  ;;  %s428_s23 = sand.u32 1, %s427_s17  ;;  %v1691_v30 = vmov 25   ;;  %v1692_v31 = vmov 27   ;;  %v1693_v32 = vmov 28   ;;  %v1694_v33 = vmov 30  }
  0x46   : > { %v353_v2 = vld [vmem:[%s323_s16] sm:$0xff]  ;;  %s429_s24 = sadd.s32 32767, %s428_s23  ;;  %s364_s25 = sshrl.u32 %s1803_s21, 16  ;;  %v380_v34 = vlaneseq }
  0x47   : > { %v1798_v3 = vpack.c.bf16 %v353_v2, %v353_v2  ;;  %s430_s27 = sadd.s32 %s1787_s11, %s429_s24  ;;  %s365_s28 = sand.u32 1, %s364_s25 }
  0x48   : > { %s431_s29 = sand.u32 4294901760, %s430_s27  ;;  %s366_s6 = sadd.s32 32767, %s365_s28  ;;  %v2008_v38 = vshrl.u32 %v380_v34, 7 }
  0x49   : > { %436 = vperm.xlu1 %1564, %v1798_v3   ;;  %374 = vperm.xlu0 %1562, %v1798_v3   ;;  %s2538_s29 = smov (%p426_p4, %s431_s29), 2143289344  ;;  %s455_s7 = sshrl.u32 %s1808_s26, 16 }
  0x4a   : > { %s367_s8 = sadd.s32 %s366_s6, %s1803_s21  ;;  %p363_p6 = scmp.ne.f32.partialorder %s1803_s21, %s1803_s21  ;;  %v2017_v39 = vsub.s32 0, %v2008_v38  ;;  %v2024_v41 = vsub.s32 1, %v2008_v38  ;;  %v2054_v54 = vsub.s32 2, %v2008_v38  ;;  %v2079_v2 = vsub.s32 3, %v2008_v38 }
  0x4b   : > { %s456_s10 = sand.u32 1, %s455_s7  ;;  %s368_s11 = sand.u32 4294901760, %s367_s8 }
  0x4c   : > { %s396_s14 = sshrl.u32 %s1815_s30, 16  ;;  %s457_s15 = sadd.s32 32767, %s456_s10 }
  0x4d   : > { %1565 = vset.pattern.permute.xlu1 %v1665_v4  ;;  %1563 = vset.pattern.permute.xlu0 %v1666_v5  ;;  %s2540_s11 = smov (%p363_p6, %s368_s11), 2143289344  ;;  %s397_s16 = sand.u32 1, %s396_s14 }
  0x4e   : > { %464 = vperm.xlu1 %1565, %v1798_v3   ;;  %405 = vperm.xlu0 %1563, %v1798_v3   ;;  %s458_s17 = sadd.s32 %s1808_s26, %s457_s15  ;;  %s483_s21 = sshrl.u32 %s1823_s9, 16 }
  0x4f   : > { %s1836_s23 = sld [smem:[#allocation4 + $0x5]]  ;;  %p454_p8 = scmp.ne.f32.partialorder %s1808_s26, %s1808_s26 }
  0x50   : > { %s398_s24 = sadd.s32 32767, %s397_s16  ;;  %s459_s25 = sand.u32 4294901760, %s458_s17 }
  0x51   : > { %s484_s27 = sand.u32 1, %s483_s21  ;;  %s399_s28 = sadd.s32 %s1815_s30, %s398_s24 }
  0x52   : > { %1566 = vset.pattern.permute.xlu1 %v1667_v6  ;;  %1567 = vset.pattern.permute.xlu0 %v1668_v7  ;;  %s2542_s25 = smov (%p454_p8, %s459_s25), 2143289344  ;;  %p395_p12 = scmp.ne.f32.partialorder %s1815_s30, %s1815_s30  ;;  %v2094_v6 = vsub.s32 4, %v2008_v38 }
  0x53   : > { %492 = vperm.xlu1 %1566, %v1798_v3   ;;  %520 = vperm.xlu0 %1567, %v1798_v3   ;;  %s485_s26 = sadd.s32 32767, %s484_s27  ;;  %s400_s6 = sand.u32 4294901760, %s399_s28 }
  0x54   : > { %s1850_s8 = sld [smem:[#allocation4 + $0x6]]  ;;  %s486_s10 = sadd.s32 %s1823_s9, %s485_s26 }
  0x55   : > { %s511_s7 = sshrl.u32 %s1836_s23, 16  ;;  %s2544_s6 = smov (%p395_p12, %s400_s6), 2143289344 }
  0x56   : > { %p482_p13 = scmp.ne.f32.partialorder %s1823_s9, %s1823_s9  ;;  %s512_s30 = sand.u32 1, %s511_s7 }
  0x57   : > { %1568 = vset.pattern.permute.xlu1 %v1669_v8  ;;  %1570 = vset.pattern.permute.xlu0 %v1670_v9  ;;  %s487_s14 = sand.u32 4294901760, %s486_s10  ;;  %s1859_s15 = sld [smem:[#allocation4 + $0x7]] }
  0x58   : > { %548 = vperm.xlu1 %1568, %v1798_v3   ;;  %604 = vperm.xlu0 %1570, %v1798_v3   ;;  %s513_s16 = sadd.s32 32767, %s512_s30  ;;  %s2546_s14 = smov (%p482_p13, %s487_s14), 2143289344 }
  0x59   : > { %s514_s9 = sadd.s32 %s1836_s23, %s513_s16  ;;  %s1867_s21 = sld [smem:[#allocation4 + $0x8]] }
  0x5a   : > { %s539_s17 = sshrl.u32 %s1850_s8, 16  ;;  %p510_p0 = scmp.ne.f32.partialorder %s1836_s23, %s1836_s23 }
  0x5b   : > { %s540_s24 = sand.u32 1, %s539_s17  ;;  %s515_s27 = sand.u32 4294901760, %s514_s9 }
  0x5c   : > { %1569 = vset.pattern.permute.xlu1 %v1671_v10  ;;  %1573 = vset.pattern.permute.xlu0 %v1672_v11  ;;  %s541_s26 = sadd.s32 32767, %s540_s24  ;;  %s2548_s27 = smov (%p510_p0, %s515_s27), 2143289344 }
  0x5d   : > { %576 = vperm.xlu1 %1569, %v1798_v3   ;;  %688 = vperm.xlu0 %1573, %v1798_v3   ;;  %s567_s28 = sshrl.u32 %s1859_s15, 16  ;;  %s542_s10 = sadd.s32 %s1850_s8, %s541_s26 }
  0x5e   : > { %s568_s7 = sand.u32 1, %s567_s28  ;;  %s1878_s30 = sld [smem:[#allocation4 + $0x9]] }
  0x5f   : > { %s595_s23 = sshrl.u32 %s1867_s21, 16  ;;  %p538_p1 = scmp.ne.f32.partialorder %s1850_s8, %s1850_s8 }
  0x60   : > { %s569_s16 = sadd.s32 32767, %s568_s7  ;;  %s543_s17 = sand.u32 4294901760, %s542_s10 }
  0x61   : > { %1571 = vset.pattern.permute.xlu1 %v1673_v12  ;;  %1576 = vset.pattern.permute.xlu0 %v1674_v13  ;;  %s596_s9 = sand.u32 1, %s595_s23  ;;  %s570_s24 = sadd.s32 %s1859_s15, %s569_s16 }
  0x62   : > { %632 = vperm.xlu1 %1571, %v1798_v3   ;;  %772 = vperm.xlu0 %1576, %v1798_v3   ;;  %s2550_s17 = smov (%p538_p1, %s543_s17), 2143289344  ;;  %p566_p2 = scmp.ne.f32.partialorder %s1859_s15, %s1859_s15 }
  0x63   : > { %s597_s8 = sadd.s32 32767, %s596_s9  ;;  %s571_s28 = sand.u32 4294901760, %s570_s24 }
  0x64   : > { %s623_s26 = sshrl.u32 %s1878_s30, 16  ;;  %s1891_s7 = sld [smem:[#allocation4 + $0xa]] }
  0x65   : > { %s598_s10 = sadd.s32 %s1867_s21, %s597_s8  ;;  %s2552_s28 = smov (%p566_p2, %s571_s28), 2143289344 }
  0x66   : > { %1572 = vset.pattern.permute.xlu1 %v1675_v14  ;;  %1579 = vset.pattern.permute.xlu0 %v1676_v15  ;;  %p594_p5 = scmp.ne.f32.partialorder %s1867_s21, %s1867_s21  ;;  %s624_s23 = sand.u32 1, %s623_s26 }
  0x67   : > { %660 = vperm.xlu1 %1572, %v1798_v3   ;;  %859 = vperm.xlu0 %1579, %v1798_v3   ;;  %s599_s15 = sand.u32 4294901760, %s598_s10  ;;  %s434_s16 = sshrl.u32 %s2538_s29, 16 }
  0x68   : > { %s1900_s9 = sld [smem:[#allocation4 + $0xb]]  ;;  %s371_s24 = sshrl.u32 %s2540_s11, 16 }
  0x69   : > { %s625_s13 = sadd.s32 32767, %s624_s23  ;;  %s2554_s15 = smov (%p594_p5, %s599_s15), 2143289344 }
  0x6a   : > { %s1483_s8 = sshll.u32 %s1790_s12, 5  ;;  %s651_s0 = sshrl.u32 %s1891_s7, 16 }
  0x6b   : > { %1574 = vset.pattern.permute.xlu1 %v1677_v16  ;;  %1582 = vset.pattern.permute.xlu0 %v1678_v17  ;;  %s445_s21 = sshll.u32 %s434_s16, 16  ;;  %s626_s26 = sadd.s32 %s1878_s30, %s625_s13 }
  0x6c   : > { %716 = vperm.xlu1 %1574, %v1798_v3   ;;  %946 = vperm.xlu0 %1582, %v1798_v3   ;;  %s386_s1 = sshll.u32 %s371_s24, 16  ;;  %s1909_s10 = sld [smem:[#allocation4 + $0xc]] }
  0x6d   : > { %p622_p7 = scmp.ne.f32.partialorder %s1878_s30, %s1878_s30  ;;  %s652_s29 = sand.u32 1, %s651_s0 }
  0x6e   : > { %s2522_s2 = sld [smem:[#allocation17_spill]]  ;;  %s627_s22 = sand.u32 4294901760, %s626_s26 }
  0x6f   : > { %s1918_s19 = sor.u32 %s445_s21, %s434_s16  ;;  %s679_s13 = sshrl.u32 %s1900_s9, 16 }
  0x70   : > { %1575 = vset.pattern.permute.xlu1 %v1679_v18  ;;  %1585 = vset.pattern.permute.xlu0 %v1680_v19  ;;  %s1922_s20 = sor.u32 %s386_s1, %s371_s24  ;;  %s653_s3 = sadd.s32 32767, %s652_s29  ;;  %v447_v55 = vstv %s1918_s19 }
  0x71   : > { %744 = vperm.xlu1 %1575, %v1798_v3   ;;  %1030 = vperm.xlu0 %1585, %v1798_v3   ;;  %s2556_s22 = smov (%p622_p7, %s627_s22), 2143289344  ;;  %s462_s0 = sshrl.u32 %s2542_s25, 16  ;;  %v388_v52 = vstv %s1922_s20 }
  0x72   : > { %s680_s30 = sand.u32 1, %s679_s13  ;;  %s654_s11 = sadd.s32 %s1891_s7, %s653_s3 }
  0x73   : > { %s707_s26 = sshrl.u32 %s1909_s10, 16  ;;  %s1930_s23 = sld [smem:[#allocation4 + $0xd]] }
  0x74   : > { %s1916_s4 = scalar_lea.vmem %s2522_s2, %s1483_s8  ;;  %s403_s8 = sshrl.u32 %s2544_s6, 16 }
  0x75   : > { %1577 = vset.pattern.permute.xlu1 %v1681_v20  ;;  %1588 = vset.pattern.permute.xlu0 %v1682_v21  ;;  %p650_p9 = scmp.ne.f32.partialorder %s1891_s7, %s1891_s7  ;;  %s681_s1 = sadd.s32 32767, %s680_s30  ;;  %v354_v35 = vld [vmem:[%s1916_s4] sm:$0xff]  ;;  %v355_v36 = vld [vmem:[%s1916_s4 + $0x8] sm:$0xff] }
  0x76   : > { %800 = vperm.xlu1 %1577, %v1798_v3   ;;  %1114 = vperm.xlu0 %1588, %v1798_v3   ;;  %s473_s16 = sshll.u32 %s462_s0, 16  ;;  %s655_s24 = sand.u32 4294901760, %s654_s11  ;;  %v359_v37 = vpack.c.bf16 %v355_v36, %v354_v35 }
  0x77   : > { %s417_s25 = sshll.u32 %s403_s8, 16  ;;  %s708_s21 = sand.u32 1, %s707_s26 }
  0x78   : > { %s682_s6 = sadd.s32 %s1900_s9, %s681_s1  ;;  %s1936_s3 = sld [smem:[#allocation4 + $0xe]]  ;;  %v2021_v40 = vpack.i.b16 %v359_v37, %v359_v37  ;;  %v408_v42 = vshrl.u32 %v359_v37, 16 }
  0x79   : > { %s2558_s24 = smov (%p650_p9, %s655_s24), 2143289344  ;;  %p678_p10 = scmp.ne.f32.partialorder %s1900_s9, %s1900_s9 }
  0x7a   : > { %1578 = vset.pattern.permute.xlu1 %v1683_v22  ;;  %1591 = vset.pattern.permute.xlu0 %v1684_v23  ;;  %s709_s7 = sadd.s32 32767, %s708_s21  ;;  %s1943_s29 = sor.u32 %s473_s16, %s462_s0  ;;  %v383_v43 = vrot.slane %v2021_v40, %v2017_v39  ;;  %v442_v44 = vrot.slane %v2021_v40, %v2024_v41  ;;  %v2037_v45 = vpack.i.b16 %v408_v42, %v408_v42 }
  0x7b   : > { %828 = vperm.xlu1 %1578, %v1798_v3   ;;  %1198 = vperm.xlu0 %1591, %v1798_v3   ;;  %s683_s13 = sand.u32 4294901760, %s682_s6  ;;  %s1945_s30 = sor.u32 %s417_s25, %s403_s8  ;;  %v498_v63 = vrot.slane %v2021_v40, %v2054_v54  ;;  %v475_v5 = vstv %s1943_s29  ;;  %v554_v14 = vrot.slane %v2021_v40, %v2079_v2  ;;  %v610_v21 = vrot.slane %v2021_v40, %v2094_v6 }
  0x7c   : > { %s735_s11 = sshrl.u32 %s1930_s23, 16  ;;  %s490_s26 = sshrl.u32 %s2546_s14, 16  ;;  %v470_v50 = vrot.slane %v2037_v45, %v2024_v41  ;;  %v414_v51 = vrot.slane %v2037_v45, %v2017_v39  ;;  %v419_v62 = vstv %s1945_s30  ;;  %v526_v0 = vrot.slane %v2037_v45, %v2054_v54 }
  0x7d   : > { %s710_s1 = sadd.s32 %s1909_s10, %s709_s7  ;;  %s2560_s13 = smov (%p678_p10, %s683_s13), 2143289344 }
  0x7e   : > { %p706_p11 = scmp.ne.f32.partialorder %s1909_s10, %s1909_s10  ;;  %s736_s9 = sand.u32 1, %s735_s11 }
  0x7f   : > { %1580 = vset.pattern.permute.xlu1 %v1685_v24  ;;  %1594 = vset.pattern.permute.xlu0 %v1686_v25  ;;  %s501_s0 = sshll.u32 %s490_s26, 16  ;;  %s711_s16 = sand.u32 4294901760, %s710_s1 }
  0x80   : > { %890 = vperm.xlu1 %1580, %v1798_v3   ;;  %s763_s21 = sshrl.u32 %s1936_s3, 16  ;;  %s1956_s8 = sld [smem:[#allocation4 + $0xf]] }
  0x81   : > { %s518_s25 = sshrl.u32 %s2548_s27, 16  ;;  %s737_s14 = sadd.s32 32767, %s736_s9 }
  0x82   : > { %s2562_s16 = smov (%p706_p11, %s711_s16), 2143289344  ;;  %s1962_s10 = sor.u32 %s501_s0, %s490_s26 }
  0x83   : > { %s764_s6 = sand.u32 1, %s763_s21  ;;  %s529_s7 = sshll.u32 %s518_s25, 16  ;;  %v503_v17 = vstv %s1962_s10 }
  0x84   : > { %1581 = vset.pattern.permute.xlu1 %v1687_v26  ;;  %s738_s11 = sadd.s32 %s1930_s23, %s737_s14  ;;  %s546_s1 = sshrl.u32 %s2550_s17, 16 }
  0x85   : > { %918 = vperm.xlu1 %1581, %v1798_v3   ;;  %s1966_s2 = sld [smem:[#allocation4 + $0x10]]  ;;  %p734_p3 = scmp.ne.f32.partialorder %s1930_s23, %s1930_s23 }
  0x86   : > { %s765_s27 = sadd.s32 32767, %s764_s6  ;;  %s1971_s9 = sor.u32 %s529_s7, %s518_s25 }
  0x87   : > { %2523 = sst [smem:[#allocation13_spill]] %s1971_s9  ;;  %s739_s18 = sand.u32 4294901760, %s738_s11 }
  0x88   : > { %s557_s26 = sshll.u32 %s546_s1, 16  ;;  %s791_s0 = sshrl.u32 %s1956_s8, 16 }
  0x89   : > { %1583 = vset.pattern.permute.xlu1 %v1688_v27  ;;  %s574_s21 = sshrl.u32 %s2552_s28, 16  ;;  %s766_s17 = sadd.s32 %s1936_s3, %s765_s27 }
  0x8a   : > { %974 = vperm.xlu1 %1583, %v1798_v3   ;;  %s2564_s18 = smov (%p734_p3, %s739_s18), 2143289344  ;;  %p762_p4 = scmp.ne.f32.partialorder %s1936_s3, %s1936_s3 }
  0x8b   : > { %s792_s23 = sand.u32 1, %s791_s0  ;;  %s585_s14 = sshll.u32 %s574_s21, 16 }
  0x8c   : > { %s767_s6 = sand.u32 4294901760, %s766_s17  ;;  %s819_s25 = sshrl.u32 %s1966_s2, 16 }
  0x8d   : > { %s1982_s7 = sld [smem:[#allocation4 + $0x11]]  ;;  %s1984_s11 = sor.u32 %s557_s26, %s546_s1 }
  0x8e   : > { %1584 = vset.pattern.permute.xlu1 %v1689_v28  ;;  %2524 = sst [smem:[#allocation14_spill]] %s1984_s11  ;;  %s793_s5 = sadd.s32 32767, %s792_s23 }
  0x8f   : > { %1002 = vperm.xlu1 %1584, %v1798_v3   ;;  %s2566_s6 = smov (%p762_p4, %s767_s6), 2143289344  ;;  %s1988_s28 = sor.u32 %s585_s14, %s574_s21 }
  0x90   : > { %s820_s27 = sand.u32 1, %s819_s25  ;;  %s602_s12 = sshrl.u32 %s2554_s15, 16 }
  0x91   : > { %s794_s3 = sadd.s32 %s1956_s8, %s793_s5  ;;  %s630_s0 = sshrl.u32 %s2556_s22, 16 }
  0x92   : > { %s1993_s17 = sld [smem:[#allocation4 + $0x12]]  ;;  %p790_p6 = scmp.ne.f32.partialorder %s1956_s8, %s1956_s8 }
  0x93   : > { %1586 = vset.pattern.permute.xlu1 %v1690_v29  ;;  %s821_s9 = sadd.s32 32767, %s820_s27  ;;  %s613_s1 = sshll.u32 %s602_s12, 16 }
  0x94   : > { %1058 = vperm.xlu1 %1586, %v1798_v3   ;;  %s795_s26 = sand.u32 4294901760, %s794_s3  ;;  %s641_s23 = sshll.u32 %s630_s0, 16 }
  0x95   : > { %s850_s11 = sshrl.u32 %s1982_s7, 16  ;;  %s822_s21 = sadd.s32 %s1966_s2, %s821_s9 }
  0x96   : > { %s2001_s14 = sld [smem:[#allocation4 + $0x13]]  ;;  %s2568_s26 = smov (%p790_p6, %s795_s26), 2143289344 }
  0x97   : > { %p818_p8 = scmp.ne.f32.partialorder %s1966_s2, %s1966_s2  ;;  %s851_s5 = sand.u32 1, %s850_s11 }
  0x98   : > { %1587 = vset.pattern.permute.xlu1 %v1691_v30  ;;  %s2010_s22 = sor.u32 %s613_s1, %s602_s12  ;;  %s823_s15 = sand.u32 4294901760, %s822_s21 }
  0x99   : > { %1086 = vperm.xlu1 %1587, %v1798_v3   ;;  %s658_s8 = sshrl.u32 %s2558_s24, 16  ;;  %s881_s9 = sshrl.u32 %s1993_s17, 16 }
  0x9a   : > { %s2014_s25 = sor.u32 %s641_s23, %s630_s0  ;;  %s852_s27 = sadd.s32 32767, %s851_s5 }
  0x9b   : > { %s2570_s15 = smov (%p818_p8, %s823_s15), 2143289344  ;;  %s669_s2 = sshll.u32 %s658_s8, 16 }
  0x9c   : > { %s882_s12 = sand.u32 1, %s881_s9  ;;  %s686_s24 = sshrl.u32 %s2560_s13, 16 }
  0x9d   : > { %1589 = vset.pattern.permute.xlu1 %v1692_v31  ;;  %s853_s11 = sadd.s32 %s1982_s7, %s852_s27  ;;  %s909_s3 = sshrl.u32 %s2001_s14, 16 }
  0x9e   : > { %1142 = vperm.xlu1 %1589, %v1798_v3   ;;  %s2029_s0 = sld [smem:[#allocation4 + $0x14]]  ;;  %p849_p12 = scmp.ne.f32.partialorder %s1982_s7, %s1982_s7 }
  0x9f   : > { %s883_s1 = sadd.s32 32767, %s882_s12  ;;  %s2039_s23 = sor.u32 %s669_s2, %s658_s8 }
  0xa0   : > { %s854_s13 = sand.u32 4294901760, %s853_s11  ;;  %s697_s21 = sshll.u32 %s686_s24, 16 }
  0xa1   : > { %s910_s5 = sand.u32 1, %s909_s3  ;;  %s714_s9 = sshrl.u32 %s2562_s16, 16 }
  0xa2   : > { %1590 = vset.pattern.permute.xlu1 %v1693_v32  ;;  %s884_s27 = sadd.s32 %s1993_s17, %s883_s1  ;;  %s2572_s13 = smov (%p849_p12, %s854_s13), 2143289344 }
  0xa3   : > { %1170 = vperm.xlu1 %1590, %v1798_v3   ;;  %p880_p13 = scmp.ne.f32.partialorder %s1993_s17, %s1993_s17  ;;  %s911_s7 = sadd.s32 32767, %s910_s5 }
  0xa4   : > { %s2056_s8 = sor.u32 %s697_s21, %s686_s24  ;;  %s885_s2 = sand.u32 4294901760, %s884_s27 }
  0xa5   : > { %s937_s12 = sshrl.u32 %s2029_s0, 16  ;;  %s2059_s11 = sld [smem:[#allocation4 + $0x15]] }
  0xa6   : > { %s725_s20 = sshll.u32 %s714_s9, 16  ;;  %s2065_s3 = sadd.s32 %s2001_s14, %s911_s7 }
  0xa7   : > { %1592 = vset.pattern.permute.xlu1 %v1694_v33  ;;  %s2574_s2 = smov (%p880_p13, %s885_s2), 2143289344  ;;  %p908_p0 = scmp.ne.f32.partialorder %s2001_s14, %s2001_s14  ;;  %v582_v33 = vrot.slane %v2037_v45, %v2079_v2 }
  0xa8   : > { %1226 = vperm.xlu1 %1592, %v1798_v3   ;;  %s2083_s19 = sand.u32 1, %s937_s12  ;;  %s2089_s30 = sor.u32 %s725_s20, %s714_s9 }
  0xa9   : > { %s913_s17 = sand.u32 4294901760, %s2065_s3  ;;  %s742_s24 = sshrl.u32 %s2564_s18, 16 }
  0xaa   : > { %s2525_s1 = sld [smem:[#allocation13_spill]]  ;;  %s2097_s21 = sld [smem:[#allocation4 + $0x16]] }
  0xab   : > { %s770_s16 = sshrl.u32 %s2566_s6, 16  ;;  %s939_s5 = sadd.s32 32767, %s2083_s19 }
  0xac   : > { %1593 = vset.pattern.permute.xlu1 %v1686_v25  ;;  %s2576_s17 = smov (%p908_p0, %s913_s17), 2143289344  ;;  %s753_s29 = sshll.u32 %s742_s24, 16 }
  0xad   : > { %1254 = vperm.xlu1 %1593, %v1798_v3   ;;  %s965_s9 = sshrl.u32 %s2059_s11, 16  ;;  %s781_s14 = sshll.u32 %s770_s16, 16 }
  0xae   : > { %s940_s27 = sadd.s32 %s2029_s0, %s939_s5  ;;  %s2526_s7 = sld [smem:[#allocation14_spill]] }
  0xaf   : > { %s798_s10 = sshrl.u32 %s2568_s26, 16  ;;  %s2121_s12 = sld [smem:[#allocation4 + $0x17]] }
  0xb0   : > { %v531_v18 = vstv %s2525_s1  ;;  %p936_p1 = scmp.ne.f32.partialorder %s2029_s0, %s2029_s0  ;;  %s966_s20 = sand.u32 1, %s965_s9 }
  0xb1   : > { %s2127_s3 = sor.u32 %s753_s29, %s742_s24  ;;  %s941_s19 = sand.u32 4294901760, %s940_s27 }
  0xb2   : > { %s2134_s1 = sor.u32 %s781_s14, %s770_s16  ;;  %s993_s5 = sshrl.u32 %s2097_s21, 16 }
  0xb3   : > { %s809_s18 = sshll.u32 %s798_s10, 16  ;;  %s967_s24 = sadd.s32 32767, %s966_s20 }
  0xb4   : > { %v559_v32 = vstv %s2526_s7  ;;  %s2578_s19 = smov (%p936_p1, %s941_s19), 2143289344  ;;  %s826_s6 = sshrl.u32 %s2570_s15, 16 }
  0xb5   : > { %s2146_s16 = sand.u32 1, %s993_s5  ;;  %s857_s29 = sshrl.u32 %s2572_s13, 16 }
  0xb6   : > { %s968_s9 = sadd.s32 %s2059_s11, %s967_s24  ;;  %s1021_s0 = sshrl.u32 %s2121_s12, 16 }
  0xb7   : > { %s2159_s14 = sld [smem:[#allocation4 + $0x18]]  ;;  %p964_p2 = scmp.ne.f32.partialorder %s2059_s11, %s2059_s11 }
  0xb8   : > { %s969_s27 = sand.u32 4294901760, %s968_s9  ;;  %s840_s7 = sshll.u32 %s826_s6, 16 }
  0xb9   : > { %s2173_s20 = sand.u32 1, %s1021_s0  ;;  %s871_s26 = sshll.u32 %s857_s29, 16 }
  0xba   : > { %s2580_s27 = smov (%p964_p2, %s969_s27), 2143289344  ;;  %p992_p5 = scmp.ne.f32.partialorder %s2097_s21, %s2097_s21 }
  0xbb   : > { %s1023_s5 = sadd.s32 32767, %s2173_s20  ;;  %s2211_s24 = sor.u32 %s871_s26, %s857_s29 }
  0xbc   : > { %p1020_p7 = scmp.ne.f32.partialorder %s2121_s12, %s2121_s12 }
  0xbd   : > { %p1048_p9 = scmp.ne.f32.partialorder %s2159_s14, %s2159_s14 }
  0xc8   : > { %v437_v46 = vpop.permute.xlu1 %436  ;;  %v375_v47 = vpop.permute.xlu0 %374 }
  0xc9   : > { %v384_v48 = vadd.bf16 %v383_v43, %v375_v47  ;;  %v443_v49 = vadd.bf16 %v442_v44, %v437_v46 }
  0xcb   : > { %v385_v53 = vmax.bf16 %v1664_v1, %v384_v48  ;;  %v444_v58 = vmax.bf16 %v1664_v1, %v443_v49  ;;  %v2150_v49 = vsub.s32 5, %v2008_v38 }
  0xcd   : > { %v465_v56 = vpop.permute.xlu1 %464  ;;  %v406_v57 = vpop.permute.xlu0 %405  ;;  %v390_v59 = vmul.bf16 %v388_v52, %v385_v53  ;;  %v449_v7 = vmul.bf16 %v447_v55, %v444_v58  ;;  %v638_v52 = vrot.slane %v2037_v45, %v2094_v6 }
  0xce   : > { %v471_v60 = vadd.bf16 %v470_v50, %v465_v56  ;;  %v415_v61 = vadd.bf16 %v414_v51, %v406_v57  ;;  %v587_v50 = vstv %s1988_s28  ;;  %v615_v51 = vstv %s2010_s22  ;;  %s995_s28 = sadd.s32 32767, %s2146_s16  ;;  %s2169_s22 = sor.u32 %s809_s18, %s798_s10 }
  0xcf   : > { %v391_v8 = vunpack.c.l.bf16 %v390_v59  ;;  %v450_v22 = vunpack.c.l.bf16 %v449_v7  ;;  %v694_v57 = vrot.slane %v2037_v45, %v2150_v49  ;;  %s2180_s10 = sadd.s32 %s2097_s21, %s995_s28  ;;  %s2206_s18 = sld [smem:[#allocation4 + $0x19]] }
  0xd0   : > { %v472_v3 = vmax.bf16 %v1664_v1, %v471_v60  ;;  %v416_v4 = vmax.bf16 %v1664_v1, %v415_v61  ;;  %s997_s11 = sand.u32 4294901760, %s2180_s10  ;;  %s1024_s16 = sadd.s32 %s2121_s12, %s1023_s5 }
  0xd1   : > { %s2582_s11 = smov (%p992_p5, %s997_s11), 2143289344  ;;  %s1025_s13 = sand.u32 4294901760, %s1024_s16 }
  0xd2   : > { %v421_v9 = vmul.bf16 %v419_v62, %v416_v4  ;;  %v493_v10 = vpop.permute.xlu1 %492  ;;  %v521_v11 = vpop.permute.xlu0 %520  ;;  %v477_v15 = vmul.bf16 %v475_v5, %v472_v3  ;;  %v643_v4 = vstv %s2014_s25  ;;  %s2202_s25 = sor.u32 %s840_s7, %s826_s6  ;;  %s2230_s21 = sld [smem:[#allocation4 + $0x1a]] }
  0xd3   : > { %v499_v12 = vadd.bf16 %v498_v63, %v493_v10  ;;  %v527_v13 = vadd.bf16 %v526_v0, %v521_v11  ;;  %v666_v63 = vrot.slane %v2021_v40, %v2150_v49  ;;  %v357_v10 = vld [vmem:[%s1916_s4 + $0x18] sm:$0xff]  ;;  %s944_s6 = sshrl.u32 %s2578_s19, 16  ;;  %s2584_s13 = smov (%p1020_p7, %s1025_s13), 2143289344 }
  0xd4   : > { %v422_v16 = vunpack.c.l.bf16 %v421_v9  ;;  %v478_v28 = vunpack.c.l.bf16 %v477_v15  ;;  %v356_v9 = vld [vmem:[%s1916_s4 + $0x10] sm:$0xff]  ;;  %s1049_s4 = sshrl.u32 %s2159_s14, 16  ;;  %s955_s12 = sshll.u32 %s944_s6, 16 }
  0xd5   : > { %v500_v19 = vmax.bf16 %v1664_v1, %v499_v12  ;;  %v528_v20 = vmax.bf16 %v1664_v1, %v527_v13  ;;  %v2198_v13 = vsub.s32 7, %v2008_v38  ;;  %s1050_s15 = sand.u32 1, %s1049_s4  ;;  %s1077_s0 = sshrl.u32 %s2206_s18, 16 }
  0xd6   : > { %v423_v23 = vadd.f32 %v422_v16, %v391_v8  ;;  %v2190_v8 = vsub.s32 6, %v2008_v38  ;;  %s1051_s29 = sadd.s32 32767, %s1050_s15  ;;  %s2252_s7 = sld [smem:[#allocation4 + $0x1b]] }
  0xd7   : > { %v505_v24 = vmul.bf16 %v503_v17, %v500_v19  ;;  %v533_v25 = vmul.bf16 %v531_v18, %v528_v20  ;;  %v549_v26 = vpop.permute.xlu1 %548  ;;  %v605_v27 = vpop.permute.xlu0 %604  ;;  %v360_v18 = vpack.c.bf16 %v357_v10, %v356_v9  ;;  %v671_v19 = vstv %s2039_s23  ;;  %s888_s23 = sshrl.u32 %s2574_s2, 16  ;;  %s2257_s20 = sand.u32 1, %s1077_s0 }
  0xd8   : > { %v451_v29 = vadd.f32 %v450_v22, %v423_v23  ;;  %v555_v30 = vadd.bf16 %v554_v14, %v549_v26  ;;  %v611_v35 = vadd.bf16 %v610_v21, %v605_v27  ;;  %v699_v20 = vstv %s2056_s8  ;;  %s916_s8 = sshrl.u32 %s2576_s17, 16  ;;  %s899_s9 = sshll.u32 %s888_s23, 16 }
  0xd9   : > { %v506_v31 = vunpack.c.l.bf16 %v505_v24  ;;  %v534_v42 = vunpack.c.l.bf16 %v533_v25  ;;  %v722_v21 = vrot.slane %v2021_v40, %v2190_v8  ;;  %v778_v25 = vrot.slane %v2021_v40, %v2198_v13  ;;  %s927_s28 = sshll.u32 %s916_s8, 16  ;;  %s2267_s26 = sor.u32 %s899_s9, %s888_s23 }
  0xda   : > { %v479_v36 = vadd.f32 %v478_v28, %v451_v29  ;;  %v556_v37 = vmax.bf16 %v1664_v1, %v555_v30  ;;  %v612_v48 = vmax.bf16 %v1664_v1, %v611_v35  ;;  %v862_v30 = vshrl.u32 %v360_v18, 16  ;;  %s2279_s2 = sor.u32 %s955_s12, %s944_s6  ;;  %s1079_s5 = sadd.s32 32767, %s2257_s20 }
  0xdb   : > { %v727_v35 = vstv %s2089_s30  ;;  %s1052_s30 = sadd.s32 %s2159_s14, %s1051_s29  ;;  %s2527_s4 = sld [smem:[#allocation12_spill]] }
  0xdc   : > { %v507_v43 = vadd.f32 %v506_v31, %v479_v36  ;;  %v561_v44 = vmul.bf16 %v559_v32, %v556_v37  ;;  %v577_v46 = vpop.permute.xlu1 %576  ;;  %v689_v58 = vpop.permute.xlu0 %688  ;;  %v617_v60 = vmul.bf16 %v615_v51, %v612_v48  ;;  %v750_v31 = vrot.slane %v2037_v45, %v2190_v8  ;;  %s1053_s10 = sand.u32 4294901760, %s1052_s30  ;;  %s972_s17 = sshrl.u32 %s2580_s27, 16 }
  0xdd   : > { %v583_v47 = vadd.bf16 %v582_v33, %v577_v46  ;;  %v695_v5 = vadd.bf16 %v694_v57, %v689_v58  ;;  %v755_v51 = vstv %s2127_s3  ;;  %s2274_s3 = sor.u32 %s927_s28, %s916_s8  ;;  %s2586_s10 = smov (%p1048_p9, %s1053_s10), 2143289344 }
  0xde   : > { %v535_v53 = vadd.f32 %v534_v42, %v507_v43  ;;  %v562_v55 = vunpack.c.l.bf16 %v561_v44  ;;  %v618_v12 = vunpack.c.l.bf16 %v617_v60  ;;  %v2245_v44 = vpack.i.b16 %v862_v30, %v862_v30  ;;  %p1076_p10 = scmp.ne.f32.partialorder %s2206_s18, %s2206_s18  ;;  %s1080_s16 = sadd.s32 %s2206_s18, %s1079_s5 }
  0xdf   : > { %v584_v56 = vmax.bf16 %v1664_v1, %v583_v47  ;;  %v696_v17 = vmax.bf16 %v1664_v1, %v695_v5  ;;  %s1133_s14 = sshrl.u32 %s2252_s7, 16  ;;  %s2528_s6 = sld [smem:[#allocation20_spill]] }
  0xe0   : > { %v563_v0 = vadd.f32 %v562_v55, %v535_v53  ;;  %v806_v53 = vrot.slane %v2037_v45, %v2198_v13  ;;  %v2263_v55 = vpack.i.b16 %v360_v18, %v360_v18  ;;  %s983_s9 = sshll.u32 %s972_s17, 16  ;;  %s1081_s0 = sand.u32 4294901760, %s1080_s16  ;;  %v873_v18 = vstv %s2211_s24 }
  0xe1   : > { %v589_v59 = vmul.bf16 %v587_v50, %v584_v56  ;;  %v633_v61 = vpop.permute.xlu1 %632  ;;  %v773_v26 = vpop.permute.xlu0 %772  ;;  %v701_v28 = vmul.bf16 %v699_v20, %v696_v17  ;;  %s1000_s28 = sshrl.u32 %s2582_s11, 16  ;;  %s2309_s30 = sand.u32 1, %s1133_s14  ;;  %v842_v17 = vstv %s2202_s25 }
  0xe2   : > { %v639_v62 = vadd.bf16 %v638_v52, %v633_v61  ;;  %v779_v36 = vadd.bf16 %v778_v25, %v773_v26  ;;  %v783_v52 = vstv %s2134_s1  ;;  %s1105_s1 = sshrl.u32 %s2230_s21, 16  ;;  %s2316_s20 = sld [smem:[#allocation4 + $0x1d]] }
  0xe3   : > { %v590_v3 = vunpack.c.l.bf16 %v589_v59  ;;  %v702_v43 = vunpack.c.l.bf16 %v701_v28  ;;  %v868_v59 = vrot.slane %v2245_v44, %v2017_v39  ;;  %s1106_s19 = sand.u32 1, %s1105_s1  ;;  %s2588_s0 = smov (%p1076_p10, %s1081_s0), 2143289344 }
  0xe4   : > { %v640_v7 = vmax.bf16 %v1664_v1, %v639_v62  ;;  %v780_v50 = vmax.bf16 %v1664_v1, %v779_v36  ;;  %s1107_s15 = sadd.s32 32767, %s1106_s19  ;;  %p1104_p11 = scmp.ne.f32.partialorder %s2230_s21, %s2230_s21 }
  0xe5   : > { %v591_v11 = vadd.f32 %v590_v3, %v563_v0  ;;  %v837_v3 = vrot.slane %v2263_v55, %v2017_v39  ;;  %s2302_s29 = scalar_lea.vmem %s2528_s6, %s2527_s4  ;;  %s1108_s12 = sadd.s32 %s2230_s21, %s1107_s15 }
  0xe6   : > { %v645_v14 = vmul.bf16 %v643_v4, %v640_v7  ;;  %v661_v15 = vpop.permute.xlu1 %660  ;;  %v860_v45 = vpop.permute.xlu0 %859  ;;  %v785_v61 = vmul.bf16 %v783_v52, %v780_v50  ;;  %s1135_s25 = sadd.s32 32767, %s2309_s30  ;;  %s2331_s24 = sor.u32 %s983_s9, %s972_s17 }
  0xe7   : > { %v667_v16 = vadd.bf16 %v666_v63, %v661_v15  ;;  %v619_v22 = vadd.f32 %v618_v12, %v591_v11  ;;  %v811_v63 = vstv %s2169_s22  ;;  %v869_v7 = vadd.bf16 %v868_v59, %v860_v45  ;;  %s2296_s22 = sld [smem:[#allocation4 + $0x1c]]  ;;  %s1109_s1 = sand.u32 4294901760, %s1108_s12 }
  0xe8   : > { %v646_v23 = vunpack.c.l.bf16 %v645_v14  ;;  %v786_v11 = vunpack.c.l.bf16 %v785_v61  ;;  %v1695_v14 = vmov 0.0   ;;  %s2337_s18 = sshll.u32 %s1000_s28, 16  ;;  %s1028_s19 = sshrl.u32 %s2584_s13, 16  ;;  %v1008_v45 = vrot.slane %v2263_v55, %v2079_v2 }
  0xe9   : > { %v668_v24 = vmax.bf16 %v1664_v1, %v667_v16  ;;  %352 = vst [vmem:[%s2302_s29] sm:$0x1] %v1695_v14  ;;  %v870_v16 = vmax.bf16 %v1664_v1, %v869_v7  ;;  %s1136_s27 = sadd.s32 %s2252_s7, %s1135_s25  ;;  %s2590_s1 = smov (%p1104_p11, %s1109_s1), 2143289344 }
  0xea   : > { %v647_v32 = vadd.f32 %v646_v23, %v619_v22  ;;  %v952_v23 = vrot.slane %v2263_v55, %v2054_v54  ;;  %p1132_p3 = scmp.ne.f32.partialorder %s2252_s7, %s2252_s7  ;;  %s1137_s16 = sand.u32 4294901760, %s1136_s27 }
  0xeb   : > { %v673_v27 = vmul.bf16 %v671_v19, %v668_v24  ;;  %v717_v29 = vpop.permute.xlu1 %716  ;;  %v896_v19 = vrot.slane %v2263_v55, %v2024_v41  ;;  %v947_v24 = vpop.permute.xlu0 %946  ;;  %v875_v26 = vmul.bf16 %v873_v18, %v870_v16  ;;  %s1189_s21 = sshrl.u32 %s2316_s20, 16  ;;  %s2355_s14 = sld [smem:[#allocation4 + $0x1e]]  ;;  %v1120_v16 = vrot.slane %v2263_v55, %v2150_v49 }
  0xec   : > { %v723_v40 = vadd.bf16 %v722_v21, %v717_v29  ;;  %v924_v29 = vrot.slane %v2245_v44, %v2024_v41  ;;  %s1056_s15 = sshrl.u32 %s2586_s10, 16  ;;  %s2592_s16 = smov (%p1132_p3, %s1137_s16), 2143289344 }
  0xed   : > { %v674_v33 = vunpack.c.l.bf16 %v673_v27  ;;  %s1161_s5 = sshrl.u32 %s2296_s22, 16  ;;  %s1067_s10 = sshll.u32 %s1056_s15, 16 }
  0xee   : > { %v724_v37 = vmax.bf16 %v1664_v1, %v723_v40  ;;  %s1162_s17 = sand.u32 1, %s1161_s5  ;;  %s2382_s11 = sld [smem:[#allocation4 + $0x1f]] }
  0xef   : > { %v675_v42 = vadd.f32 %v674_v33, %v647_v32  ;;  %v953_v32 = vadd.bf16 %v952_v23, %v947_v24  ;;  %s1163_s23 = sadd.s32 32767, %s1162_s17  ;;  %p1160_p4 = scmp.ne.f32.partialorder %s2296_s22, %s2296_s22 }
  0xf0   : > { %v729_v46 = vmul.bf16 %v727_v35, %v724_v37  ;;  %v745_v47 = vpop.permute.xlu1 %744  ;;  %v876_v35 = vunpack.c.l.bf16 %v875_v26  ;;  %s1164_s8 = sadd.s32 %s2296_s22, %s1163_s23  ;;  %s2388_s13 = sor.u32 %s1067_s10, %s1056_s15 }
  0xf1   : > { %v751_v48 = vadd.bf16 %v750_v31, %v745_v47  ;;  %v703_v56 = vadd.f32 %v702_v43, %v675_v42  ;;  %v901_v31 = vstv %s2267_s26  ;;  %s1039_s26 = sshll.u32 %s1028_s19, 16  ;;  %v954_v43 = vmax.bf16 %v1664_v1, %v953_v32  ;;  %s1165_s9 = sand.u32 4294901760, %s1164_s8 }
  0xf2   : > { %v730_v57 = vunpack.c.l.bf16 %v729_v46  ;;  %v929_v46 = vstv %s2274_s3  ;;  %v957_v47 = vstv %s2279_s2  ;;  %s2373_s3 = sor.u32 %s2337_s18, %s1000_s28  ;;  %s1190_s2 = sand.u32 1, %s1189_s21 }
  0xf3   : > { %v752_v58 = vmax.bf16 %v1664_v1, %v751_v48  ;;  %v980_v48 = vrot.slane %v2245_v44, %v2054_v54  ;;  %s2380_s7 = sor.u32 %s1039_s26, %s1028_s19  ;;  %s1191_s6 = sadd.s32 32767, %s1190_s2 }
  0xf4   : > { %v731_v4 = vadd.f32 %v730_v57, %v703_v56  ;;  %v1031_v56 = vpop.permute.xlu0 %1030  ;;  %v959_v57 = vmul.bf16 %v957_v47, %v954_v43  ;;  %s1084_s28 = sshrl.u32 %s2588_s0, 16  ;;  %s1217_s30 = sshrl.u32 %s2355_s14, 16 }
  0xf5   : > { %v757_v60 = vmul.bf16 %v755_v51, %v752_v58  ;;  %v801_v62 = vpop.permute.xlu1 %800  ;;  %s1112_s12 = sshrl.u32 %s2590_s1, 16  ;;  %s1192_s25 = sadd.s32 %s2316_s20, %s1191_s6 }
  0xf6   : > { %v807_v0 = vadd.bf16 %v806_v53, %v801_v62  ;;  %v1036_v53 = vrot.slane %v2245_v44, %v2079_v2  ;;  %v985_v62 = vstv %s2331_s24  ;;  %s2594_s9 = smov (%p1160_p4, %s1165_s9), 2143289344  ;;  %p1188_p6 = scmp.ne.f32.partialorder %s2316_s20, %s2316_s20 }
  0xf7   : > { %v758_v5 = vunpack.c.l.bf16 %v757_v60  ;;  %s1218_s24 = sand.u32 1, %s1217_s30  ;;  %s1095_s18 = sshll.u32 %s1084_s28, 16 }
  0xf8   : > { %v808_v9 = vmax.bf16 %v1664_v1, %v807_v0  ;;  %s1193_s22 = sand.u32 4294901760, %s1192_s25  ;;  %s1123_s5 = sshll.u32 %s1112_s12, 16 }
  0xf9   : > { %v759_v10 = vadd.f32 %v758_v5, %v731_v4  ;;  %s1245_s19 = sshrl.u32 %s2382_s11, 16  ;;  %s1140_s27 = sshrl.u32 %s2592_s16, 16 }
  0xfa   : > { %v813_v39 = vmul.bf16 %v811_v63, %v808_v9  ;;  %v829_v12 = vpop.permute.xlu1 %828  ;;  %v1037_v63 = vadd.bf16 %v1036_v53, %v1031_v56  ;;  %s1219_s17 = sadd.s32 32767, %s1218_s24  ;;  %s2596_s22 = smov (%p1188_p6, %s1193_s22), 2143289344 }
  0xfb   : > { %v838_v15 = vadd.bf16 %v837_v3, %v829_v12  ;;  %v787_v20 = vadd.f32 %v786_v11, %v759_v10  ;;  %v960_v3 = vunpack.c.l.bf16 %v959_v57  ;;  %v1013_v10 = vstv %s2373_s3  ;;  %s2425_s26 = sor.u32 %s1095_s18, %s1084_s28  ;;  %s1246_s21 = sand.u32 1, %s1245_s19 }
  0xfc   : > { %v814_v21 = vunpack.c.l.bf16 %v813_v39  ;;  %v1038_v9 = vmax.bf16 %v1664_v1, %v1037_v63  ;;  %v1041_v11 = vstv %s2380_s7  ;;  %v1064_v39 = vrot.slane %v2263_v55, %v2094_v6  ;;  %s1124_s16 = sor.u32 %s1123_s5, %s1112_s12  ;;  %s1220_s15 = sadd.s32 %s2355_s14, %s1219_s17 }
  0xfd   : > { %v839_v22 = vmax.bf16 %v1664_v1, %v838_v15  ;;  %s1151_s20 = sshll.u32 %s1140_s27, 16  ;;  %s1168_s23 = sshrl.u32 %s2594_s9, 16  ;;  %v1097_v32 = vstv %s2425_s26  ;;  %v1232_v63 = vrot.slane %v2263_v55, %v2198_v13 }
  0xfe   : > { %v815_v30 = vadd.f32 %v814_v21, %v787_v20  ;;  %p1216_p8 = scmp.ne.f32.partialorder %s2355_s14, %s2355_s14  ;;  %s1247_s0 = sadd.s32 32767, %s1246_s21 }
  0xff   : > { %v844_v25 = vmul.bf16 %v842_v17, %v839_v22  ;;  %v891_v27 = vpop.permute.xlu1 %890  ;;  %v1115_v17 = vpop.permute.xlu0 %1114  ;;  %v1092_v22 = vrot.slane %v2245_v44, %v2094_v6  ;;  %s1221_s1 = sand.u32 4294901760, %s1220_s15  ;;  %s1152_s3 = sor.u32 %s1151_s20, %s1140_s27 }
 0x100   : > { %v897_v28 = vadd.bf16 %v896_v19, %v891_v27  ;;  %v1043_v19 = vmul.bf16 %v1041_v11, %v1038_v9  ;;  %v1121_v26 = vadd.bf16 %v1120_v16, %v1115_v17  ;;  %s1196_s2 = sshrl.u32 %s2596_s22, 16  ;;  %s1179_s10 = sshll.u32 %s1168_s23, 16  ;;  %v1153_v53 = vstv %s1152_s3 }
 0x101   : > { %v845_v40 = vunpack.c.l.bf16 %v844_v25  ;;  %v1069_v25 = vstv %s2388_s13  ;;  %s1248_s8 = sadd.s32 %s2382_s11, %s1247_s0  ;;  %s2598_s1 = smov (%p1216_p8, %s1221_s1), 2143289344 }
 0x102   : > { %v898_v33 = vmax.bf16 %v1664_v1, %v897_v28  ;;  %v1044_v28 = vunpack.c.l.bf16 %v1043_v19  ;;  %s1207_s7 = sshll.u32 %s1196_s2, 16  ;;  %p1244_p12 = scmp.ne.f32.partialorder %s2382_s11, %s2382_s11 }
 0x103   : > { %v846_v41 = vadd.f32 %v845_v40, %v815_v30  ;;  %v1199_v43 = vpop.permute.xlu0 %1198  ;;  %s1249_s6 = sand.u32 4294901760, %s1248_s8  ;;  %s1180_s14 = sor.u32 %s1179_s10, %s1168_s23 }
 0x104   : > { %v903_v36 = vmul.bf16 %v901_v31, %v898_v33  ;;  %v919_v37 = vpop.permute.xlu1 %918  ;;  %v1122_v31 = vmax.bf16 %v1664_v1, %v1121_v26  ;;  %v1125_v33 = vstv %s1124_s16  ;;  %s1208_s13 = sor.u32 %s1207_s7, %s1196_s2  ;;  %s1224_s28 = sshrl.u32 %s2598_s1, 16 }
 0x105   : > { %v925_v42 = vadd.bf16 %v924_v29, %v919_v37  ;;  %v877_v50 = vadd.f32 %v876_v35, %v846_v41  ;;  %v1148_v41 = vrot.slane %v2245_v44, %v2150_v49  ;;  %s2600_s6 = smov (%p1244_p12, %s1249_s6), 2143289344  ;;  %s1235_s30 = sshll.u32 %s1224_s28, 16 }
 0x106   : > { %v904_v51 = vunpack.c.l.bf16 %v903_v36  ;;  %v1127_v49 = vmul.bf16 %v1125_v33, %v1122_v31  ;;  %s1252_s9 = sshrl.u32 %s2600_s6, 16  ;;  %s1236_s12 = sor.u32 %s1235_s30, %s1224_s28  ;;  %v1281_v31 = vand.u32 127, %v380_v34 }
 0x107   : > { %v926_v52 = vmax.bf16 %v1664_v1, %v925_v42  ;;  %v1204_v42 = vrot.slane %v2245_v44, %v2190_v8  ;;  %s1263_s11 = sshll.u32 %s1252_s9, 16  ;;  %s1480_s24 = sld [smem:[#allocation4 + $0x20]] }
 0x108   : > { %v905_v60 = vadd.f32 %v904_v51, %v877_v50  ;;  %v1176_v50 = vrot.slane %v2263_v55, %v2190_v8  ;;  %s1264_s25 = sor.u32 %s1263_s11, %s1252_s9  ;;  %s2529_s18 = sld [smem:[#allocation8_spill]] }
 0x109   : > { %v931_v54 = vmul.bf16 %v929_v46, %v926_v52  ;;  %v975_v58 = vpop.permute.xlu1 %974  ;;  %v1205_v56 = vadd.bf16 %v1204_v42, %v1199_v43  ;;  %v1265_v19 = vstv %s1264_s25  ;;  %s2530_s5 = sshll.u32 %s2527_s4, 3  ;;  %s2531_s17 = sld [smem:[#allocation18_spill]] }
 0x10a   : > { %v981_v59 = vadd.bf16 %v980_v48, %v975_v58  ;;  %v1128_v58 = vunpack.c.l.bf16 %v1127_v49 }
 0x10b   : > { %v932_v61 = vunpack.c.l.bf16 %v931_v54  ;;  %v1206_v8 = vmax.bf16 %v1664_v1, %v1205_v56  ;;  %v1307_v56 = vld [vmem:[%s2302_s29] sm:$0x1] }
 0x10c   : > { %v982_v2 = vmax.bf16 %v1664_v1, %v981_v59 }
 0x10d   : > { %v933_v0 = vadd.f32 %v932_v61, %v905_v60  ;;  %v1181_v61 = vstv %s1180_s14 }
 0x10e   : > { %v987_v4 = vmul.bf16 %v985_v62, %v982_v2  ;;  %v1003_v5 = vpop.permute.xlu1 %1002  ;;  %v1209_v62 = vstv %s1208_s13  ;;  %s1274_s22 = sld [smem:[#allocation2 + %s2529_s18]] }
 0x10f   : > { %v1009_v7 = vadd.bf16 %v1008_v45, %v1003_v5  ;;  %v961_v12 = vadd.f32 %v960_v3, %v933_v0  ;;  %v1211_v5 = vmul.bf16 %v1209_v62, %v1206_v8  ;;  %s341_s26 = scalar_lea.vmem %s2531_s17, %s2530_s5 }
 0x110   : > { %v988_v14 = vunpack.c.l.bf16 %v987_v4 }
 0x111   : > { %v1010_v15 = vmax.bf16 %v1664_v1, %v1009_v7 }
 0x112   : > { %v989_v23 = vadd.f32 %v988_v14, %v961_v12  ;;  %v1260_v12 = vrot.slane %v2245_v44, %v2198_v13  ;;  %v1271_v13 = vstv %s1480_s24 }
 0x113   : > { %v1015_v18 = vmul.bf16 %v1013_v10, %v1010_v15  ;;  %v1059_v20 = vpop.permute.xlu1 %1058  ;;  %v1212_v15 = vunpack.c.l.bf16 %v1211_v5 }
 0x114   : > { %v1065_v21 = vadd.bf16 %v1064_v39, %v1059_v20  ;;  %v1237_v39 = vstv %s1236_s12 }
 0x115   : > { %v1016_v24 = vunpack.c.l.bf16 %v1015_v18 }
 0x116   : > { %v1066_v27 = vmax.bf16 %v1664_v1, %v1065_v21 }
 0x117   : > { %v1017_v6 = vadd.f32 %v1016_v24, %v989_v23 }
 0x118   : > { %v1071_v29 = vmul.bf16 %v1069_v25, %v1066_v27  ;;  %v1087_v30 = vpop.permute.xlu1 %1086 }
 0x119   : > { %v1093_v40 = vadd.bf16 %v1092_v22, %v1087_v30  ;;  %v1045_v35 = vadd.f32 %v1044_v28, %v1017_v6 }
 0x11a   : > { %v1072_v36 = vunpack.c.l.bf16 %v1071_v29 }
 0x11b   : > { %v1094_v37 = vmax.bf16 %v1664_v1, %v1093_v40  ;;  %v1273_v40 = vld [vmem:[%s341_s26] sm:$0xff] }
 0x11c   : > { %v1073_v51 = vadd.f32 %v1072_v36, %v1045_v35 }
 0x11d   : > { %v1099_v46 = vmul.bf16 %v1097_v32, %v1094_v37  ;;  %v1143_v47 = vpop.permute.xlu1 %1142  ;;  %v1285_v32 = vstv %s1274_s22 }
 0x11e   : > { %v1149_v48 = vadd.bf16 %v1148_v41, %v1143_v47  ;;  %vm1286_vm0 = vcmp.lt.s32.totalorder %v2008_v38, %v1285_v32  ;;  %vm1287_vm1 = vcmp.lt.s32.totalorder %v1281_v31, %v1285_v32 }
 0x11f   : > { %v1100_v52 = vunpack.c.l.bf16 %v1099_v46  ;;  %vm1288_vm3 = vmand %vm1286_vm0, %vm1287_vm1 }
 0x120   : > { %v1150_v54 = vmax.bf16 %v1664_v1, %v1149_v48 }
 0x121   : > { %v1101_v57 = vadd.f32 %v1100_v52, %v1073_v51 }
 0x122   : > { %v1155_v59 = vmul.bf16 %v1153_v53, %v1150_v54  ;;  %v1171_v45 = vpop.permute.xlu1 %1170 }
 0x123   : > { %v1177_v60 = vadd.bf16 %v1176_v50, %v1171_v45  ;;  %v1129_v2 = vadd.f32 %v1128_v58, %v1101_v57 }
 0x124   : > { %v1156_v0 = vunpack.c.l.bf16 %v1155_v59 }
 0x125   : > { %v1178_v3 = vmax.bf16 %v1664_v1, %v1177_v60 }
 0x126   : > { %v1157_v10 = vadd.f32 %v1156_v0, %v1129_v2 }
 0x127   : > { %v1183_v4 = vmul.bf16 %v1181_v61, %v1178_v3  ;;  %v1227_v7 = vpop.permute.xlu1 %1226 }
 0x128   : > { %v1233_v9 = vadd.bf16 %v1232_v63, %v1227_v7 }
 0x129   : > { %v1184_v11 = vunpack.c.l.bf16 %v1183_v4 }
 0x12a   : > { %v1234_v14 = vmax.bf16 %v1664_v1, %v1233_v9 }
 0x12b   : > { %v1185_v55 = vadd.f32 %v1184_v11, %v1157_v10 }
 0x12c   : > { %v1239_v16 = vmul.bf16 %v1237_v39, %v1234_v14  ;;  %v1255_v17 = vpop.permute.xlu1 %1254 }
 0x12d   : > { %v1261_v18 = vadd.bf16 %v1260_v12, %v1255_v17  ;;  %v1213_v20 = vadd.f32 %v1212_v15, %v1185_v55 }
 0x12e   : > { %v1240_v21 = vunpack.c.l.bf16 %v1239_v16 }
 0x12f   : > { %v1262_v22 = vmax.bf16 %v1664_v1, %v1261_v18 }
 0x130   : > { %v1241_v24 = vadd.f32 %v1240_v21, %v1213_v20 }
 0x131   : > { %v1267_v23 = vmul.bf16 %v1265_v19, %v1262_v22 }
 0x133   : > { %v1268_v25 = vunpack.c.l.bf16 %v1267_v23 }
 0x135   : > { %v1269_v44 = vadd.f32 %v1268_v25, %v1241_v24 }
 0x137   : > { %v1272_v26 = vadd.f32 %v1271_v13, %v1269_v44 }
 0x139   : > { %v1292_v27 = vand.u32 2147483647, %v1272_v26  ;;  %v1289_v41 = vmax.f32 %v1272_v26, 0.0  ;;  %v1290_v35 = vmul.f32 %v1273_v40, %v1272_v26 }
 0x13b   : > { %v1293_v6 = vsub.f32 0.0, %v1292_v27  ;;  %v1291_v46 = vsub.f32 %v1289_v41, %v1290_v35 }
 0x13d   : > { %v1294_v28 = vmul.f32 1.442695, %v1293_v6 }
 0x13f   : > { %1595 = vpow2.f32 %v1294_v28 }
 0x149   : > { %v1596_v29 = vpop.eup %1595 }
 0x14a   : > { %v1296_v30 = vadd.f32 1.0, %v1596_v29  ;;  %v1299_v1 = vmul.f32 -0.5, %v1596_v29  ;;  %v1302_v36 = vand.u32 2147483647, %v1596_v29 }
 0x14c   : > { %1597 = vlog2.f32 %v1296_v30  ;;  %v1300_v33 = vadd.f32 1.0, %v1299_v1  ;;  %vm1303_vm2 = vcmp.lt.f32.partialorder %v1302_v36, 0.0004427343 }
 0x14e   : > { %v1301_v43 = vmul.f32 %v1596_v29, %v1300_v33 }
 0x156   : > { %v1598_v37 = vpop.eup %1597 }
 0x157   : > { %v1298_v42 = vmul.f32 0.6931472, %v1598_v37 }
 0x159   : > { %v1304_v49 = vsel %vm1303_vm2, %v1301_v43, %v1298_v42 }
 0x15a   : > { %v1305_v47 = vadd.f32 %v1304_v49, %v1291_v46 }
 0x15c   : > { %v1306_v48 = vsel %vm1288_vm3, %v1305_v47, 0.0 }
 0x15d   : > { %v1308_v34 = vrot.slane %v1306_v48, 4 }
 0x15f   : > { %v1309_v50 = vadd.f32 %v1308_v34, %v1306_v48 }
 0x161   : > { %v1310_v51 = vrot.slane %v1309_v50, 2 }
 0x163   : > { %v1311_v52 = vadd.f32 %v1310_v51, %v1309_v50 }
 0x165   : > { %v1312_v53 = vrot.slane %v1311_v52, 1 }
 0x167   : > { %v1313_v54 = vadd.f32 %v1312_v53, %v1311_v52 }
 0x169   : > { %v1314_v57 = vadd.f32 %v1313_v54, %v1307_v56 }
 0x16b   : > { %1315 = vst [vmem:[%s2302_s29] sm:$0x1] %v1314_v57 }
 0x16c PF: > { %s2532_s4 = sld [smem:[#allocation10_spill]]  ;;  %s2533_s18 = sld [smem:[#allocation9_spill]] }
 0x16d   : > { %s2534_s19 = sld [smem:[#allocation11_spill]] }
 0x172   : > { %s17_s20 = sadd.s32 1, %s2532_s4  }
 0x173   : > { %p14_p13 = scmp.ge.s32.totalorder %s17_s20, 4  }
 0x175   :  { %16 = sbr.rel (!%p14_p13) target bundleno = 10 (0xa), region = 89 }
 0x17c   :  { %1333 = vsyncpa [#allocation3], 1 }
 0x17d   :  { %1335 = vsyncpa [#allocation3 + $0x1], 1 }
 0x17e   :  { %1336 = vsyncpa [#allocation5], 1 }

</bundles_post_ra>
